<compile_context>
chip_gen: v7x
topology: tpu7x:2x2x1
jax: 0.10.0
libtpu: 0.0.40
codegen_flags: <defaults>
</compile_context>

<pallas_src>
import functools

import jax
import jax.numpy as jnp
from jax import lax
from jax.experimental import pallas as pl
from jax.experimental.pallas import tpu as pltpu

EPS = 1e-5


# --------------------------------------------------------------------------
# Fused kernel: ONE grid step = whole batch, both (norm -> conv -> ReLU) blocks.
# --------------------------------------------------------------------------
def _high_block_kernel(x_ref, mask_ref, affb_ref, w1_ref, w2_ref,
                       o_ref, im2_ref, *, B, C1, C2, W, use_bf16):
    # x_ref:    (B*C1, HW)   input, rows batch-major per-channel, lanes = H*W
    # mask_ref: (8, HW)      f32 {0,1} validity mask per non-center conv tap
    # affb_ref: (B*C1 + B*C2 + C2, 2)
    #             rows [0      : B*C1)        -> [gamma1 | beta1]  (batch-major)
    #             rows [B*C1   : B*C1+B*C2)   -> [gamma2 | beta2]  (batch-major)
    #             rows [B*C1+B*C2 : ... +C2)  -> [bias1  | bias2 ]
    # w1_ref:   (C2, 9*C1)   conv1 weight, columns ordered (tap, cin)
    # w2_ref:   (C2, 9*C2)   conv2 weight
    # o_ref:    (B*C2, HW)
    # im2_ref:  (9*C2, B*HW) VMEM scratch, block-2 im2col (fully rewritten)
    HW = x_ref.shape[1]
    inv_hw = 1.0 / HW
    r1 = B * C1
    r2 = B * C2

    masks = mask_ref[...]                                   # hoisted (8, HW)

    def norm_affine(x, g, b):
        # x: (R, HW); every row is an independent (batch, channel) image.
        # One fused cross-lane reduction gives sum(x) and sum(x^2) together,
        # then the conditional affine is folded into a single scale/shift.
        R = x.shape[0]
        s = jnp.sum(jnp.concatenate([x, x * x], axis=0), axis=1, keepdims=True)
        mean = s[:R] * inv_hw
        var = s[R:] * inv_hw - mean * mean                  # biased variance
        scale = g * lax.rsqrt(var + EPS)
        shift = b - mean * scale
        return x * scale + shift                            # (R, HW)

    def build_rhs(y, C, store_ref=None):
        # y: (B*C, HW) -> im2col RHS (9*C, B*HW); rows (tap, cin), lanes
        # batch-major.  Each tap is a lane roll of the flattened image plus a
        # precomputed border mask (3x3 SAME padding).  If store_ref is None the
        # RHS is built in registers; otherwise it is written to VMEM scratch.
        rows = []
        for k in range(9):
            d_y, d_x = k // 3 - 1, k % 3 - 1
            s = d_y * W + d_x
            if s == 0:
                tap = y
            else:
                mrow = k if k < 4 else k - 1                # center tap dropped
                tap = pltpu.roll(y, (-s) % HW, axis=1)
                tap = tap * masks[mrow:mrow + 1, :]
            # (B*C, HW) -> (C, B*HW): 256-lane-aligned half placement (cheap)
            tap = jnp.concatenate(
                [tap[bb * C:(bb + 1) * C, :] for bb in range(B)], axis=1)
            if store_ref is None:
                rows.append(tap)
            else:
                store_ref[k * C:(k + 1) * C, :] = tap.astype(store_ref.dtype)
        if store_ref is None:
            return jnp.concatenate(rows, axis=0)            # (9*C, B*HW)
        return None

    def conv_relu(rhs, w_ref, bias):
        acc = jnp.dot(w_ref[...], rhs, preferred_element_type=jnp.float32)
        return jnp.maximum(acc + bias, 0.0)                 # (C2, B*HW)

    bias1 = affb_ref[r1 + r2:r1 + r2 + C2, 0:1]
    bias2 = affb_ref[r1 + r2:r1 + r2 + C2, 1:2]

    # --- block 1: norm_1 -> conv_1 -> ReLU (RHS built in registers) ---
    y1 = norm_affine(x_ref[...], affb_ref[0:r1, 0:1], affb_ref[0:r1, 1:2])
    rhs1 = build_rhs(y1, C1)
    if use_bf16:
        rhs1 = rhs1.astype(jnp.bfloat16)
    h = conv_relu(rhs1, w1_ref, bias1)                      # (C2, B*HW)

    # --- block 2: norm_2 -> conv_2 -> ReLU (intermediate stays on-chip) ---
    # Rearrange to (B*C2, HW) row layout so the norm / rolls reuse block-1 code.
    h_rows = jnp.concatenate(
        [h[:, bb * HW:(bb + 1) * HW] for bb in range(B)], axis=0)
    y2 = norm_affine(h_rows, affb_ref[r1:r1 + r2, 0:1], affb_ref[r1:r1 + r2, 1:2])
    build_rhs(y2, C2, store_ref=im2_ref)
    out = conv_relu(im2_ref[...], w2_ref, bias2)            # (C2, B*HW)

    # Write output in (B*C2, HW) layout (lane-dense, 256-wide unmasked stores).
    for bb in range(B):
        o_ref[bb * C2:(bb + 1) * C2, :] = out[:, bb * HW:(bb + 1) * HW]


# --------------------------------------------------------------------------
# Host-side glue
# --------------------------------------------------------------------------
def _reshape_conv_weight(w_oihw):
    # (Cout, Cin, 3, 3) -> (Cout, 9*Cin), column index = (ky*3 + kx)*Cin + cin
    Cout, Cin, _, _ = w_oihw.shape
    return jnp.transpose(w_oihw, (0, 2, 3, 1)).reshape(Cout, 9 * Cin)


def _make_tap_masks(H, W):
    # (8, H*W) masks for the 8 non-center 3x3 taps (center tap is never masked).
    p = jnp.arange(H * W, dtype=jnp.int32)
    y = p // W
    x = p % W
    rows = []
    for k in range(9):
        if k == 4:
            continue
        d_y, d_x = k // 3 - 1, k % 3 - 1
        m = (y + d_y >= 0) & (y + d_y < H) & (x + d_x >= 0) & (x + d_x < W)
        rows.append(m.astype(jnp.float32))
    return jnp.stack(rows, axis=0)


def high_block_pallas(xcat_nchw, gamma1, beta1, w1, b1, gamma2, beta2, w2, b2,
                      *, use_bf16=False):
    """Fused HighBlock. xcat_nchw: (B, C1, H, W); returns (B, C2, H, W)."""
    B, C1, H, W = xcat_nchw.shape
    C2 = w1.shape[0]
    HW = H * W

    x_flat = xcat_nchw.reshape(B * C1, HW)       # free reshape, stays NCHW
    masks = _make_tap_masks(H, W)                # (8, HW)
    w1f = _reshape_conv_weight(w1)               # (C2, 9*C1)
    w2f = _reshape_conv_weight(w2)               # (C2, 9*C2)
    im_dtype = jnp.float32
    if use_bf16:
        w1f = w1f.astype(jnp.bfloat16)
        w2f = w2f.astype(jnp.bfloat16)
        im_dtype = jnp.bfloat16

    # Pack all per-channel affine params + conv biases into ONE tiny operand.
    affb = jnp.concatenate([
        jnp.stack([gamma1.reshape(-1), beta1.reshape(-1)], axis=1),  # (B*C1, 2)
        jnp.stack([gamma2.reshape(-1), beta2.reshape(-1)], axis=1),  # (B*C2, 2)
        jnp.stack([b1, b2], axis=1),                                 # (C2,   2)
    ], axis=0).astype(jnp.float32)
    n_affb = B * C1 + B * C2 + C2

    kernel = functools.partial(_high_block_kernel, B=B, C1=C1, C2=C2, W=W,
                               use_bf16=use_bf16)
    out = pl.pallas_call(
        kernel,
        out_shape=jax.ShapeDtypeStruct((B * C2, HW), jnp.float32),
        grid=(1,),
        in_specs=[
            pl.BlockSpec((B * C1, HW), lambda i: (0, 0)),    # x
            pl.BlockSpec((8, HW), lambda i: (0, 0)),         # tap masks
            pl.BlockSpec((n_affb, 2), lambda i: (0, 0)),     # gamma/beta/bias
            pl.BlockSpec((C2, 9 * C1), lambda i: (0, 0)),    # w1
            pl.BlockSpec((C2, 9 * C2), lambda i: (0, 0)),    # w2
        ],
        out_specs=pl.BlockSpec((B * C2, HW), lambda i: (0, 0)),
        scratch_shapes=[pltpu.VMEM((9 * C2, B * HW), im_dtype)],
        compiler_params=pltpu.CompilerParams(
            dimension_semantics=("arbitrary",)),
    )(x_flat, masks, affb, w1f, w2f)

    return out.reshape(B, C2, H, W)


def init_high_block_params(key, input_dim, hidden_dim, num_embedding=10):
    c1_in = input_dim * 2
    k = jax.random.split(key, 6)
    return {
        # ConditionalInstanceNorm2d embeddings: normal(0, 0.02)
        "emb1": 0.02 * jax.random.normal(k[0], (num_embedding, 2 * c1_in), jnp.float32),
        "emb2": 0.02 * jax.random.normal(k[1], (num_embedding, 2 * hidden_dim), jnp.float32),
        # Conv weights/biases (synthetic small-scale init, not a checkpoint)
        "w1": 0.1 * jax.random.normal(k[2], (hidden_dim, c1_in, 3, 3), jnp.float32),
        "b1": 0.05 * jax.random.normal(k[3], (hidden_dim,), jnp.float32),
        "w2": 0.1 * jax.random.normal(k[4], (hidden_dim, hidden_dim, 3, 3), jnp.float32),
        "b2": 0.05 * jax.random.normal(k[5], (hidden_dim,), jnp.float32),
    }


@jax.jit
def high_block_forward(x, skip_feature, t, params):
    """x, skip_feature: (B, C, H, W) f32 (NCHW); t: (B,) int32."""
    xcat = jnp.concatenate([skip_feature, x], axis=1)       # (B, 2C, H, W)
    c1 = xcat.shape[1]
    hd = params["w1"].shape[0]
    e1 = params["emb1"][t]                                  # embedding lookup (glue)
    e2 = params["emb2"][t]
    return high_block_pallas(
        xcat,
        e1[:, :c1], e1[:, c1:], params["w1"], params["b1"],
        e2[:, :hd], e2[:, hd:], params["w2"], params["b2"])


# ------------------------- pure-JAX reference (verification) ---------------
def _ref_cond_inorm(x_nchw, gamma, beta):
    mean = jnp.mean(x_nchw, axis=(2, 3), keepdims=True)
    var = jnp.mean(jnp.square(x_nchw - mean), axis=(2, 3), keepdims=True)
    out = (x_nchw - mean) * lax.rsqrt(var + EPS)
    return gamma[:, :, None, None] * out + beta[:, :, None, None]


def _ref_conv3x3(x_nchw, w_oihw, bias):
    y = lax.conv_general_dilated(
        x_nchw, w_oihw, window_strides=(1, 1), padding=((1, 1), (1, 1)),
        dimension_numbers=("NCHW", "OIHW", "NCHW"))
    return y + bias[None, :, None, None]


def high_block_reference(x, skip_feature, t, params):
    xcat = jnp.concatenate([skip_feature, x], axis=1)
    c1 = xcat.shape[1]
    hd = params["w1"].shape[0]
    e1 = params["emb1"][t]
    out = _ref_cond_inorm(xcat, e1[:, :c1], e1[:, c1:])
    out = jax.nn.relu(_ref_conv3x3(out, params["w1"], params["b1"]))
    e2 = params["emb2"][t]
    out = _ref_cond_inorm(out, e2[:, :hd], e2[:, hd:])
    out = jax.nn.relu(_ref_conv3x3(out, params["w2"], params["b2"]))
    return out


if __name__ == "__main__":
    B, input_dim, hidden_dim, H, W = 2, 4, 32, 16, 16

    key = jax.random.PRNGKey(0)
    k_x, k_s, k_t, k_p = jax.random.split(key, 4)
    x = jax.random.normal(k_x, (B, input_dim, H, W), jnp.float32)
    skip = jax.random.normal(k_s, (B, input_dim, H, W), jnp.float32)
    t = jax.random.randint(k_t, (B,), 0, 10, jnp.int32)
    params = init_high_block_params(k_p, input_dim, hidden_dim)

    out = jax.block_until_ready(high_block_forward(x, skip, t, params))
    assert out.shape == (B, hidden_dim, H, W), out.shape

    ref = jax.block_until_ready(high_block_reference(x, skip, t, params))
    if not jnp.allclose(out, ref, atol=1e-4, rtol=1e-4):
        err = float(jnp.max(jnp.abs(out - ref)))
        raise AssertionError(f"Pallas output does not match reference (max abs err {err})")

    print("KERNEL_OK")
</pallas_src>

<mosaic_0001>
module attributes {stable_mosaic.version = 11 : i64} {
  func.func @_high_block_kernel(%arg0: i32, %arg1: memref<16x256xf32, #tpu.memory_space<vmem>>, %arg2: memref<8x256xf32, #tpu.memory_space<vmem>>, %arg3: memref<112x2xf32, #tpu.memory_space<vmem>>, %arg4: memref<32x72xf32, #tpu.memory_space<vmem>>, %arg5: memref<32x288xf32, #tpu.memory_space<vmem>>, %arg6: memref<64x256xf32, #tpu.memory_space<vmem>>, %arg7: memref<288x512xf32, #tpu.memory_space<vmem>>) attributes {dimension_semantics = [#tpu.dimension_semantics<arbitrary>], iteration_bounds = array<i64: 1>, scalar_prefetch = 0 : i64, scratch_operands = 1 : i64, tpu.core_type = #tpu.core_type<tc>, window_params = [{pipeline_mode = #tpu.pipeline_mode<synchronous>, transform_indices = @transform_0, window_bounds = array<i64: 16, 256>}, {pipeline_mode = #tpu.pipeline_mode<synchronous>, transform_indices = @transform_1, window_bounds = array<i64: 8, 256>}, {pipeline_mode = #tpu.pipeline_mode<synchronous>, transform_indices = @transform_2, window_bounds = array<i64: 112, 2>}, {pipeline_mode = #tpu.pipeline_mode<synchronous>, transform_indices = @transform_3, window_bounds = array<i64: 32, 72>}, {pipeline_mode = #tpu.pipeline_mode<synchronous>, transform_indices = @transform_4, window_bounds = array<i64: 32, 288>}, {pipeline_mode = #tpu.pipeline_mode<synchronous>, transform_indices = @transform_5, window_bounds = array<i64: 64, 256>}]} {
    %c0 = arith.constant 0 : index
    %c0_0 = arith.constant 0 : index
    %0 = vector.load %arg2[%c0, %c0_0] : memref<8x256xf32, #tpu.memory_space<vmem>>, vector<8x256xf32>
    %c80 = arith.constant 80 : index
    %c0_1 = arith.constant 0 : index
    %1 = vector.load %arg3[%c80, %c0_1] : memref<112x2xf32, #tpu.memory_space<vmem>>, vector<32x1xf32>
    %c80_2 = arith.constant 80 : index
    %c1 = arith.constant 1 : index
    %2 = vector.load %arg3[%c80_2, %c1] : memref<112x2xf32, #tpu.memory_space<vmem>>, vector<32x1xf32>
    %c0_3 = arith.constant 0 : index
    %c0_4 = arith.constant 0 : index
    %3 = vector.load %arg1[%c0_3, %c0_4] : memref<16x256xf32, #tpu.memory_space<vmem>>, vector<16x256xf32>
    %c0_5 = arith.constant 0 : index
    %c0_6 = arith.constant 0 : index
    %4 = vector.load %arg3[%c0_5, %c0_6] : memref<112x2xf32, #tpu.memory_space<vmem>>, vector<16x1xf32>
    %c0_7 = arith.constant 0 : index
    %c1_8 = arith.constant 1 : index
    %5 = vector.load %arg3[%c0_7, %c1_8] : memref<112x2xf32, #tpu.memory_space<vmem>>, vector<16x1xf32>
    %6 = arith.mulf %3, %3 : vector<16x256xf32>
    %7 = tpu.concatenate %3, %6 in 0 : vector<16x256xf32>, vector<16x256xf32> -> vector<32x256xf32>
    %cst = arith.constant dense<0.000000e+00> : vector<32xf32>
    %8 = vector.multi_reduction <add>, %7, %cst [1] : vector<32x256xf32> to vector<32xf32>
    %9 = vector.shape_cast %8 : vector<32xf32> to vector<32x1xf32>
    %10 = vector.extract_strided_slice %9 {offsets = [0, 0], sizes = [16, 1], strides = [1, 1]} : vector<32x1xf32> to vector<16x1xf32>
    %cst_9 = arith.constant 3.906250e-03 : f32
    %11 = vector.broadcast %cst_9 : f32 to vector<16x1xf32>
    %12 = arith.mulf %10, %11 : vector<16x1xf32>
    %13 = vector.extract_strided_slice %9 {offsets = [16, 0], sizes = [16, 1], strides = [1, 1]} : vector<32x1xf32> to vector<16x1xf32>
    %cst_10 = arith.constant 3.906250e-03 : f32
    %14 = vector.broadcast %cst_10 : f32 to vector<16x1xf32>
    %15 = arith.mulf %13, %14 : vector<16x1xf32>
    %16 = arith.mulf %12, %12 : vector<16x1xf32>
    %17 = arith.subf %15, %16 : vector<16x1xf32>
    %cst_11 = arith.constant 9.99999974E-6 : f32
    %18 = vector.broadcast %cst_11 : f32 to vector<16x1xf32>
    %19 = arith.addf %17, %18 : vector<16x1xf32>
    %20 = math.rsqrt %19 : vector<16x1xf32>
    %21 = arith.mulf %4, %20 : vector<16x1xf32>
    %22 = arith.mulf %12, %21 : vector<16x1xf32>
    %23 = arith.subf %5, %22 : vector<16x1xf32>
    %24 = vector.broadcast %21 : vector<16x1xf32> to vector<16x256xf32>
    %25 = arith.mulf %3, %24 : vector<16x256xf32>
    %26 = vector.broadcast %23 : vector<16x1xf32> to vector<16x256xf32>
    %27 = arith.addf %25, %26 : vector<16x256xf32>
    %c17_i32 = arith.constant 17 : i32
    %28 = tpu.dynamic_rotate %27 by %c17_i32 dim 1 : vector<16x256xf32>, i32 -> vector<16x256xf32>
    %29 = vector.extract_strided_slice %0 {offsets = [0, 0], sizes = [1, 256], strides = [1, 1]} : vector<8x256xf32> to vector<1x256xf32>
    %30 = vector.broadcast %29 : vector<1x256xf32> to vector<16x256xf32>
    %31 = arith.mulf %28, %30 : vector<16x256xf32>
    %32 = vector.extract_strided_slice %31 {offsets = [0, 0], sizes = [8, 256], strides = [1, 1]} : vector<16x256xf32> to vector<8x256xf32>
    %33 = vector.extract_strided_slice %31 {offsets = [8, 0], sizes = [8, 256], strides = [1, 1]} : vector<16x256xf32> to vector<8x256xf32>
    %34 = tpu.concatenate %32, %33 in 1 : vector<8x256xf32>, vector<8x256xf32> -> vector<8x512xf32>
    %c16_i32 = arith.constant 16 : i32
    %35 = tpu.dynamic_rotate %27 by %c16_i32 dim 1 : vector<16x256xf32>, i32 -> vector<16x256xf32>
    %36 = vector.extract_strided_slice %0 {offsets = [1, 0], sizes = [1, 256], strides = [1, 1]} : vector<8x256xf32> to vector<1x256xf32>
    %37 = vector.broadcast %36 : vector<1x256xf32> to vector<16x256xf32>
    %38 = arith.mulf %35, %37 : vector<16x256xf32>
    %39 = vector.extract_strided_slice %38 {offsets = [0, 0], sizes = [8, 256], strides = [1, 1]} : vector<16x256xf32> to vector<8x256xf32>
    %40 = vector.extract_strided_slice %38 {offsets = [8, 0], sizes = [8, 256], strides = [1, 1]} : vector<16x256xf32> to vector<8x256xf32>
    %41 = tpu.concatenate %39, %40 in 1 : vector<8x256xf32>, vector<8x256xf32> -> vector<8x512xf32>
    %c15_i32 = arith.constant 15 : i32
    %42 = tpu.dynamic_rotate %27 by %c15_i32 dim 1 : vector<16x256xf32>, i32 -> vector<16x256xf32>
    %43 = vector.extract_strided_slice %0 {offsets = [2, 0], sizes = [1, 256], strides = [1, 1]} : vector<8x256xf32> to vector<1x256xf32>
    %44 = vector.broadcast %43 : vector<1x256xf32> to vector<16x256xf32>
    %45 = arith.mulf %42, %44 : vector<16x256xf32>
    %46 = vector.extract_strided_slice %45 {offsets = [0, 0], sizes = [8, 256], strides = [1, 1]} : vector<16x256xf32> to vector<8x256xf32>
    %47 = vector.extract_strided_slice %45 {offsets = [8, 0], sizes = [8, 256], strides = [1, 1]} : vector<16x256xf32> to vector<8x256xf32>
    %48 = tpu.concatenate %46, %47 in 1 : vector<8x256xf32>, vector<8x256xf32> -> vector<8x512xf32>
    %c1_i32 = arith.constant 1 : i32
    %49 = tpu.dynamic_rotate %27 by %c1_i32 dim 1 : vector<16x256xf32>, i32 -> vector<16x256xf32>
    %50 = vector.extract_strided_slice %0 {offsets = [3, 0], sizes = [1, 256], strides = [1, 1]} : vector<8x256xf32> to vector<1x256xf32>
    %51 = vector.broadcast %50 : vector<1x256xf32> to vector<16x256xf32>
    %52 = arith.mulf %49, %51 : vector<16x256xf32>
    %53 = vector.extract_strided_slice %52 {offsets = [0, 0], sizes = [8, 256], strides = [1, 1]} : vector<16x256xf32> to vector<8x256xf32>
    %54 = vector.extract_strided_slice %52 {offsets = [8, 0], sizes = [8, 256], strides = [1, 1]} : vector<16x256xf32> to vector<8x256xf32>
    %55 = tpu.concatenate %53, %54 in 1 : vector<8x256xf32>, vector<8x256xf32> -> vector<8x512xf32>
    %56 = vector.extract_strided_slice %27 {offsets = [0, 0], sizes = [8, 256], strides = [1, 1]} : vector<16x256xf32> to vector<8x256xf32>
    %57 = vector.extract_strided_slice %27 {offsets = [8, 0], sizes = [8, 256], strides = [1, 1]} : vector<16x256xf32> to vector<8x256xf32>
    %58 = tpu.concatenate %56, %57 in 1 : vector<8x256xf32>, vector<8x256xf32> -> vector<8x512xf32>
    %c255_i32 = arith.constant 255 : i32
    %59 = tpu.dynamic_rotate %27 by %c255_i32 dim 1 : vector<16x256xf32>, i32 -> vector<16x256xf32>
    %60 = vector.extract_strided_slice %0 {offsets = [4, 0], sizes = [1, 256], strides = [1, 1]} : vector<8x256xf32> to vector<1x256xf32>
    %61 = vector.broadcast %60 : vector<1x256xf32> to vector<16x256xf32>
    %62 = arith.mulf %59, %61 : vector<16x256xf32>
    %63 = vector.extract_strided_slice %62 {offsets = [0, 0], sizes = [8, 256], strides = [1, 1]} : vector<16x256xf32> to vector<8x256xf32>
    %64 = vector.extract_strided_slice %62 {offsets = [8, 0], sizes = [8, 256], strides = [1, 1]} : vector<16x256xf32> to vector<8x256xf32>
    %65 = tpu.concatenate %63, %64 in 1 : vector<8x256xf32>, vector<8x256xf32> -> vector<8x512xf32>
    %c241_i32 = arith.constant 241 : i32
    %66 = tpu.dynamic_rotate %27 by %c241_i32 dim 1 : vector<16x256xf32>, i32 -> vector<16x256xf32>
    %67 = vector.extract_strided_slice %0 {offsets = [5, 0], sizes = [1, 256], strides = [1, 1]} : vector<8x256xf32> to vector<1x256xf32>
    %68 = vector.broadcast %67 : vector<1x256xf32> to vector<16x256xf32>
    %69 = arith.mulf %66, %68 : vector<16x256xf32>
    %70 = vector.extract_strided_slice %69 {offsets = [0, 0], sizes = [8, 256], strides = [1, 1]} : vector<16x256xf32> to vector<8x256xf32>
    %71 = vector.extract_strided_slice %69 {offsets = [8, 0], sizes = [8, 256], strides = [1, 1]} : vector<16x256xf32> to vector<8x256xf32>
    %72 = tpu.concatenate %70, %71 in 1 : vector<8x256xf32>, vector<8x256xf32> -> vector<8x512xf32>
    %c240_i32 = arith.constant 240 : i32
    %73 = tpu.dynamic_rotate %27 by %c240_i32 dim 1 : vector<16x256xf32>, i32 -> vector<16x256xf32>
    %74 = vector.extract_strided_slice %0 {offsets = [6, 0], sizes = [1, 256], strides = [1, 1]} : vector<8x256xf32> to vector<1x256xf32>
    %75 = vector.broadcast %74 : vector<1x256xf32> to vector<16x256xf32>
    %76 = arith.mulf %73, %75 : vector<16x256xf32>
    %77 = vector.extract_strided_slice %76 {offsets = [0, 0], sizes = [8, 256], strides = [1, 1]} : vector<16x256xf32> to vector<8x256xf32>
    %78 = vector.extract_strided_slice %76 {offsets = [8, 0], sizes = [8, 256], strides = [1, 1]} : vector<16x256xf32> to vector<8x256xf32>
    %79 = tpu.concatenate %77, %78 in 1 : vector<8x256xf32>, vector<8x256xf32> -> vector<8x512xf32>
    %c239_i32 = arith.constant 239 : i32
    %80 = tpu.dynamic_rotate %27 by %c239_i32 dim 1 : vector<16x256xf32>, i32 -> vector<16x256xf32>
    %81 = vector.extract_strided_slice %0 {offsets = [7, 0], sizes = [1, 256], strides = [1, 1]} : vector<8x256xf32> to vector<1x256xf32>
    %82 = vector.broadcast %81 : vector<1x256xf32> to vector<16x256xf32>
    %83 = arith.mulf %80, %82 : vector<16x256xf32>
    %84 = vector.extract_strided_slice %83 {offsets = [0, 0], sizes = [8, 256], strides = [1, 1]} : vector<16x256xf32> to vector<8x256xf32>
    %85 = vector.extract_strided_slice %83 {offsets = [8, 0], sizes = [8, 256], strides = [1, 1]} : vector<16x256xf32> to vector<8x256xf32>
    %86 = tpu.concatenate %84, %85 in 1 : vector<8x256xf32>, vector<8x256xf32> -> vector<8x512xf32>
    %87 = tpu.concatenate %34, %41, %48, %55, %58, %65, %72, %79, %86 in 0 : vector<8x512xf32>, vector<8x512xf32>, vector<8x512xf32>, vector<8x512xf32>, vector<8x512xf32>, vector<8x512xf32>, vector<8x512xf32>, vector<8x512xf32>, vector<8x512xf32> -> vector<72x512xf32>
    %c0_12 = arith.constant 0 : index
    %c0_13 = arith.constant 0 : index
    %88 = vector.load %arg4[%c0_12, %c0_13] : memref<32x72xf32, #tpu.memory_space<vmem>>, vector<32x72xf32>
    %cst_14 = arith.constant dense<0.000000e+00> : vector<32x512xf32>
    %89 = tpu.matmul %88, %87, %cst_14 {dimension_numbers = #tpu.dot_dimension_numbers<[1], [0], [0], [1], [0, 0, 1, 1], [], []>} : vector<32x72xf32>, vector<72x512xf32>, vector<32x512xf32> -> vector<32x512xf32>
    %90 = vector.broadcast %1 : vector<32x1xf32> to vector<32x512xf32>
    %91 = arith.addf %89, %90 : vector<32x512xf32>
    %cst_15 = arith.constant 0.000000e+00 : f32
    %92 = vector.broadcast %cst_15 : f32 to vector<32x512xf32>
    %93 = arith.maximumf %91, %92 : vector<32x512xf32>
    %94 = vector.extract_strided_slice %93 {offsets = [0, 0], sizes = [32, 256], strides = [1, 1]} : vector<32x512xf32> to vector<32x256xf32>
    %95 = vector.extract_strided_slice %93 {offsets = [0, 256], sizes = [32, 256], strides = [1, 1]} : vector<32x512xf32> to vector<32x256xf32>
    %96 = tpu.concatenate %94, %95 in 0 : vector<32x256xf32>, vector<32x256xf32> -> vector<64x256xf32>
    %c16 = arith.constant 16 : index
    %c0_16 = arith.constant 0 : index
    %97 = vector.load %arg3[%c16, %c0_16] : memref<112x2xf32, #tpu.memory_space<vmem>>, vector<64x1xf32>
    %c16_17 = arith.constant 16 : index
    %c1_18 = arith.constant 1 : index
    %98 = vector.load %arg3[%c16_17, %c1_18] : memref<112x2xf32, #tpu.memory_space<vmem>>, vector<64x1xf32>
    %99 = arith.mulf %96, %96 : vector<64x256xf32>
    %100 = tpu.concatenate %96, %99 in 0 : vector<64x256xf32>, vector<64x256xf32> -> vector<128x256xf32>
    %cst_19 = arith.constant dense<0.000000e+00> : vector<128xf32>
    %101 = vector.multi_reduction <add>, %100, %cst_19 [1] : vector<128x256xf32> to vector<128xf32>
    %102 = vector.shape_cast %101 : vector<128xf32> to vector<128x1xf32>
    %103 = vector.extract_strided_slice %102 {offsets = [0, 0], sizes = [64, 1], strides = [1, 1]} : vector<128x1xf32> to vector<64x1xf32>
    %cst_20 = arith.constant 3.906250e-03 : f32
    %104 = vector.broadcast %cst_20 : f32 to vector<64x1xf32>
    %105 = arith.mulf %103, %104 : vector<64x1xf32>
    %106 = vector.extract_strided_slice %102 {offsets = [64, 0], sizes = [64, 1], strides = [1, 1]} : vector<128x1xf32> to vector<64x1xf32>
    %cst_21 = arith.constant 3.906250e-03 : f32
    %107 = vector.broadcast %cst_21 : f32 to vector<64x1xf32>
    %108 = arith.mulf %106, %107 : vector<64x1xf32>
    %109 = arith.mulf %105, %105 : vector<64x1xf32>
    %110 = arith.subf %108, %109 : vector<64x1xf32>
    %cst_22 = arith.constant 9.99999974E-6 : f32
    %111 = vector.broadcast %cst_22 : f32 to vector<64x1xf32>
    %112 = arith.addf %110, %111 : vector<64x1xf32>
    %113 = math.rsqrt %112 : vector<64x1xf32>
    %114 = arith.mulf %97, %113 : vector<64x1xf32>
    %115 = arith.mulf %105, %114 : vector<64x1xf32>
    %116 = arith.subf %98, %115 : vector<64x1xf32>
    %117 = vector.broadcast %114 : vector<64x1xf32> to vector<64x256xf32>
    %118 = arith.mulf %96, %117 : vector<64x256xf32>
    %119 = vector.broadcast %116 : vector<64x1xf32> to vector<64x256xf32>
    %120 = arith.addf %118, %119 : vector<64x256xf32>
    %c17_i32_23 = arith.constant 17 : i32
    %121 = tpu.dynamic_rotate %120 by %c17_i32_23 dim 1 : vector<64x256xf32>, i32 -> vector<64x256xf32>
    %122 = vector.extract_strided_slice %0 {offsets = [0, 0], sizes = [1, 256], strides = [1, 1]} : vector<8x256xf32> to vector<1x256xf32>
    %123 = vector.broadcast %122 : vector<1x256xf32> to vector<64x256xf32>
    %124 = arith.mulf %121, %123 : vector<64x256xf32>
    %125 = vector.extract_strided_slice %124 {offsets = [0, 0], sizes = [32, 256], strides = [1, 1]} : vector<64x256xf32> to vector<32x256xf32>
    %126 = vector.extract_strided_slice %124 {offsets = [32, 0], sizes = [32, 256], strides = [1, 1]} : vector<64x256xf32> to vector<32x256xf32>
    %127 = tpu.concatenate %125, %126 in 1 : vector<32x256xf32>, vector<32x256xf32> -> vector<32x512xf32>
    %c0_24 = arith.constant 0 : index
    %c0_25 = arith.constant 0 : index
    %128 = vector.load %arg7[%c0_24, %c0_25] : memref<288x512xf32, #tpu.memory_space<vmem>>, vector<32x512xf32>
    tpu.vector_store %arg7[%c0_24, %c0_25], %127 {strides = array<i32>} : memref<288x512xf32, #tpu.memory_space<vmem>>, vector<32x512xf32>,
    %c16_i32_26 = arith.constant 16 : i32
    %129 = tpu.dynamic_rotate %120 by %c16_i32_26 dim 1 : vector<64x256xf32>, i32 -> vector<64x256xf32>
    %130 = vector.extract_strided_slice %0 {offsets = [1, 0], sizes = [1, 256], strides = [1, 1]} : vector<8x256xf32> to vector<1x256xf32>
    %131 = vector.broadcast %130 : vector<1x256xf32> to vector<64x256xf32>
    %132 = arith.mulf %129, %131 : vector<64x256xf32>
    %133 = vector.extract_strided_slice %132 {offsets = [0, 0], sizes = [32, 256], strides = [1, 1]} : vector<64x256xf32> to vector<32x256xf32>
    %134 = vector.extract_strided_slice %132 {offsets = [32, 0], sizes = [32, 256], strides = [1, 1]} : vector<64x256xf32> to vector<32x256xf32>
    %135 = tpu.concatenate %133, %134 in 1 : vector<32x256xf32>, vector<32x256xf32> -> vector<32x512xf32>
    %c32 = arith.constant 32 : index
    %c0_27 = arith.constant 0 : index
    %136 = vector.load %arg7[%c32, %c0_27] : memref<288x512xf32, #tpu.memory_space<vmem>>, vector<32x512xf32>
    tpu.vector_store %arg7[%c32, %c0_27], %135 {strides = array<i32>} : memref<288x512xf32, #tpu.memory_space<vmem>>, vector<32x512xf32>,
    %c15_i32_28 = arith.constant 15 : i32
    %137 = tpu.dynamic_rotate %120 by %c15_i32_28 dim 1 : vector<64x256xf32>, i32 -> vector<64x256xf32>
    %138 = vector.extract_strided_slice %0 {offsets = [2, 0], sizes = [1, 256], strides = [1, 1]} : vector<8x256xf32> to vector<1x256xf32>
    %139 = vector.broadcast %138 : vector<1x256xf32> to vector<64x256xf32>
    %140 = arith.mulf %137, %139 : vector<64x256xf32>
    %141 = vector.extract_strided_slice %140 {offsets = [0, 0], sizes = [32, 256], strides = [1, 1]} : vector<64x256xf32> to vector<32x256xf32>
    %142 = vector.extract_strided_slice %140 {offsets = [32, 0], sizes = [32, 256], strides = [1, 1]} : vector<64x256xf32> to vector<32x256xf32>
    %143 = tpu.concatenate %141, %142 in 1 : vector<32x256xf32>, vector<32x256xf32> -> vector<32x512xf32>
    %c64 = arith.constant 64 : index
    %c0_29 = arith.constant 0 : index
    %144 = vector.load %arg7[%c64, %c0_29] : memref<288x512xf32, #tpu.memory_space<vmem>>, vector<32x512xf32>
    tpu.vector_store %arg7[%c64, %c0_29], %143 {strides = array<i32>} : memref<288x512xf32, #tpu.memory_space<vmem>>, vector<32x512xf32>,
    %c1_i32_30 = arith.constant 1 : i32
    %145 = tpu.dynamic_rotate %120 by %c1_i32_30 dim 1 : vector<64x256xf32>, i32 -> vector<64x256xf32>
    %146 = vector.extract_strided_slice %0 {offsets = [3, 0], sizes = [1, 256], strides = [1, 1]} : vector<8x256xf32> to vector<1x256xf32>
    %147 = vector.broadcast %146 : vector<1x256xf32> to vector<64x256xf32>
    %148 = arith.mulf %145, %147 : vector<64x256xf32>
    %149 = vector.extract_strided_slice %148 {offsets = [0, 0], sizes = [32, 256], strides = [1, 1]} : vector<64x256xf32> to vector<32x256xf32>
    %150 = vector.extract_strided_slice %148 {offsets = [32, 0], sizes = [32, 256], strides = [1, 1]} : vector<64x256xf32> to vector<32x256xf32>
    %151 = tpu.concatenate %149, %150 in 1 : vector<32x256xf32>, vector<32x256xf32> -> vector<32x512xf32>
    %c96 = arith.constant 96 : index
    %c0_31 = arith.constant 0 : index
    %152 = vector.load %arg7[%c96, %c0_31] : memref<288x512xf32, #tpu.memory_space<vmem>>, vector<32x512xf32>
    tpu.vector_store %arg7[%c96, %c0_31], %151 {strides = array<i32>} : memref<288x512xf32, #tpu.memory_space<vmem>>, vector<32x512xf32>,
    %153 = vector.extract_strided_slice %120 {offsets = [0, 0], sizes = [32, 256], strides = [1, 1]} : vector<64x256xf32> to vector<32x256xf32>
    %154 = vector.extract_strided_slice %120 {offsets = [32, 0], sizes = [32, 256], strides = [1, 1]} : vector<64x256xf32> to vector<32x256xf32>
    %155 = tpu.concatenate %153, %154 in 1 : vector<32x256xf32>, vector<32x256xf32> -> vector<32x512xf32>
    %c128 = arith.constant 128 : index
    %c0_32 = arith.constant 0 : index
    %156 = vector.load %arg7[%c128, %c0_32] : memref<288x512xf32, #tpu.memory_space<vmem>>, vector<32x512xf32>
    tpu.vector_store %arg7[%c128, %c0_32], %155 {strides = array<i32>} : memref<288x512xf32, #tpu.memory_space<vmem>>, vector<32x512xf32>,
    %c255_i32_33 = arith.constant 255 : i32
    %157 = tpu.dynamic_rotate %120 by %c255_i32_33 dim 1 : vector<64x256xf32>, i32 -> vector<64x256xf32>
    %158 = vector.extract_strided_slice %0 {offsets = [4, 0], sizes = [1, 256], strides = [1, 1]} : vector<8x256xf32> to vector<1x256xf32>
    %159 = vector.broadcast %158 : vector<1x256xf32> to vector<64x256xf32>
    %160 = arith.mulf %157, %159 : vector<64x256xf32>
    %161 = vector.extract_strided_slice %160 {offsets = [0, 0], sizes = [32, 256], strides = [1, 1]} : vector<64x256xf32> to vector<32x256xf32>
    %162 = vector.extract_strided_slice %160 {offsets = [32, 0], sizes = [32, 256], strides = [1, 1]} : vector<64x256xf32> to vector<32x256xf32>
    %163 = tpu.concatenate %161, %162 in 1 : vector<32x256xf32>, vector<32x256xf32> -> vector<32x512xf32>
    %c160 = arith.constant 160 : index
    %c0_34 = arith.constant 0 : index
    %164 = vector.load %arg7[%c160, %c0_34] : memref<288x512xf32, #tpu.memory_space<vmem>>, vector<32x512xf32>
    tpu.vector_store %arg7[%c160, %c0_34], %163 {strides = array<i32>} : memref<288x512xf32, #tpu.memory_space<vmem>>, vector<32x512xf32>,
    %c241_i32_35 = arith.constant 241 : i32
    %165 = tpu.dynamic_rotate %120 by %c241_i32_35 dim 1 : vector<64x256xf32>, i32 -> vector<64x256xf32>
    %166 = vector.extract_strided_slice %0 {offsets = [5, 0], sizes = [1, 256], strides = [1, 1]} : vector<8x256xf32> to vector<1x256xf32>
    %167 = vector.broadcast %166 : vector<1x256xf32> to vector<64x256xf32>
    %168 = arith.mulf %165, %167 : vector<64x256xf32>
    %169 = vector.extract_strided_slice %168 {offsets = [0, 0], sizes = [32, 256], strides = [1, 1]} : vector<64x256xf32> to vector<32x256xf32>
    %170 = vector.extract_strided_slice %168 {offsets = [32, 0], sizes = [32, 256], strides = [1, 1]} : vector<64x256xf32> to vector<32x256xf32>
    %171 = tpu.concatenate %169, %170 in 1 : vector<32x256xf32>, vector<32x256xf32> -> vector<32x512xf32>
    %c192 = arith.constant 192 : index
    %c0_36 = arith.constant 0 : index
    %172 = vector.load %arg7[%c192, %c0_36] : memref<288x512xf32, #tpu.memory_space<vmem>>, vector<32x512xf32>
    tpu.vector_store %arg7[%c192, %c0_36], %171 {strides = array<i32>} : memref<288x512xf32, #tpu.memory_space<vmem>>, vector<32x512xf32>,
    %c240_i32_37 = arith.constant 240 : i32
    %173 = tpu.dynamic_rotate %120 by %c240_i32_37 dim 1 : vector<64x256xf32>, i32 -> vector<64x256xf32>
    %174 = vector.extract_strided_slice %0 {offsets = [6, 0], sizes = [1, 256], strides = [1, 1]} : vector<8x256xf32> to vector<1x256xf32>
    %175 = vector.broadcast %174 : vector<1x256xf32> to vector<64x256xf32>
    %176 = arith.mulf %173, %175 : vector<64x256xf32>
    %177 = vector.extract_strided_slice %176 {offsets = [0, 0], sizes = [32, 256], strides = [1, 1]} : vector<64x256xf32> to vector<32x256xf32>
    %178 = vector.extract_strided_slice %176 {offsets = [32, 0], sizes = [32, 256], strides = [1, 1]} : vector<64x256xf32> to vector<32x256xf32>
    %179 = tpu.concatenate %177, %178 in 1 : vector<32x256xf32>, vector<32x256xf32> -> vector<32x512xf32>
    %c224 = arith.constant 224 : index
    %c0_38 = arith.constant 0 : index
    %180 = vector.load %arg7[%c224, %c0_38] : memref<288x512xf32, #tpu.memory_space<vmem>>, vector<32x512xf32>
    tpu.vector_store %arg7[%c224, %c0_38], %179 {strides = array<i32>} : memref<288x512xf32, #tpu.memory_space<vmem>>, vector<32x512xf32>,
    %c239_i32_39 = arith.constant 239 : i32
    %181 = tpu.dynamic_rotate %120 by %c239_i32_39 dim 1 : vector<64x256xf32>, i32 -> vector<64x256xf32>
    %182 = vector.extract_strided_slice %0 {offsets = [7, 0], sizes = [1, 256], strides = [1, 1]} : vector<8x256xf32> to vector<1x256xf32>
    %183 = vector.broadcast %182 : vector<1x256xf32> to vector<64x256xf32>
    %184 = arith.mulf %181, %183 : vector<64x256xf32>
    %185 = vector.extract_strided_slice %184 {offsets = [0, 0], sizes = [32, 256], strides = [1, 1]} : vector<64x256xf32> to vector<32x256xf32>
    %186 = vector.extract_strided_slice %184 {offsets = [32, 0], sizes = [32, 256], strides = [1, 1]} : vector<64x256xf32> to vector<32x256xf32>
    %187 = tpu.concatenate %185, %186 in 1 : vector<32x256xf32>, vector<32x256xf32> -> vector<32x512xf32>
    %c256 = arith.constant 256 : index
    %c0_40 = arith.constant 0 : index
    %188 = vector.load %arg7[%c256, %c0_40] : memref<288x512xf32, #tpu.memory_space<vmem>>, vector<32x512xf32>
    tpu.vector_store %arg7[%c256, %c0_40], %187 {strides = array<i32>} : memref<288x512xf32, #tpu.memory_space<vmem>>, vector<32x512xf32>,
    %c0_41 = arith.constant 0 : index
    %c0_42 = arith.constant 0 : index
    %189 = vector.load %arg7[%c0_41, %c0_42] : memref<288x512xf32, #tpu.memory_space<vmem>>, vector<288x512xf32>
    %c0_43 = arith.constant 0 : index
    %c0_44 = arith.constant 0 : index
    %190 = vector.load %arg5[%c0_43, %c0_44] : memref<32x288xf32, #tpu.memory_space<vmem>>, vector<32x288xf32>
    %cst_45 = arith.constant dense<0.000000e+00> : vector<32x512xf32>
    %191 = tpu.matmul %190, %189, %cst_45 {dimension_numbers = #tpu.dot_dimension_numbers<[1], [0], [0], [1], [0, 0, 1, 1], [], []>} : vector<32x288xf32>, vector<288x512xf32>, vector<32x512xf32> -> vector<32x512xf32>
    %192 = vector.broadcast %2 : vector<32x1xf32> to vector<32x512xf32>
    %193 = arith.addf %191, %192 : vector<32x512xf32>
    %cst_46 = arith.constant 0.000000e+00 : f32
    %194 = vector.broadcast %cst_46 : f32 to vector<32x512xf32>
    %195 = arith.maximumf %193, %194 : vector<32x512xf32>
    %196 = vector.extract_strided_slice %195 {offsets = [0, 0], sizes = [32, 256], strides = [1, 1]} : vector<32x512xf32> to vector<32x256xf32>
    %c0_47 = arith.constant 0 : index
    %c0_48 = arith.constant 0 : index
    %197 = vector.load %arg6[%c0_47, %c0_48] : memref<64x256xf32, #tpu.memory_space<vmem>>, vector<32x256xf32>
    tpu.vector_store %arg6[%c0_47, %c0_48], %196 {strides = array<i32>} : memref<64x256xf32, #tpu.memory_space<vmem>>, vector<32x256xf32>,
    %198 = vector.extract_strided_slice %195 {offsets = [0, 256], sizes = [32, 256], strides = [1, 1]} : vector<32x512xf32> to vector<32x256xf32>
    %c32_49 = arith.constant 32 : index
    %c0_50 = arith.constant 0 : index
    %199 = vector.load %arg6[%c32_49, %c0_50] : memref<64x256xf32, #tpu.memory_space<vmem>>, vector<32x256xf32>
    tpu.vector_store %arg6[%c32_49, %c0_50], %198 {strides = array<i32>} : memref<64x256xf32, #tpu.memory_space<vmem>>, vector<32x256xf32>,
    return
  }
  func.func @transform_0(%arg0: i32) -> (i32, i32) {
    %c0_i32 = arith.constant 0 : i32
    %c0_i32_0 = arith.constant 0 : i32
    %c0_i32_1 = arith.constant 0 : i32
    return %c0_i32, %c0_i32_0 : i32, i32
  }
  func.func @transform_1(%arg0: i32) -> (i32, i32) {
    %c0_i32 = arith.constant 0 : i32
    %c0_i32_0 = arith.constant 0 : i32
    %c0_i32_1 = arith.constant 0 : i32
    return %c0_i32, %c0_i32_0 : i32, i32
  }
  func.func @transform_2(%arg0: i32) -> (i32, i32) {
    %c0_i32 = arith.constant 0 : i32
    %c0_i32_0 = arith.constant 0 : i32
    %c0_i32_1 = arith.constant 0 : i32
    return %c0_i32, %c0_i32_0 : i32, i32
  }
  func.func @transform_3(%arg0: i32) -> (i32, i32) {
    %c0_i32 = arith.constant 0 : i32
    %c0_i32_0 = arith.constant 0 : i32
    %c0_i32_1 = arith.constant 0 : i32
    return %c0_i32, %c0_i32_0 : i32, i32
  }
  func.func @transform_4(%arg0: i32) -> (i32, i32) {
    %c0_i32 = arith.constant 0 : i32
    %c0_i32_0 = arith.constant 0 : i32
    %c0_i32_1 = arith.constant 0 : i32
    return %c0_i32, %c0_i32_0 : i32, i32
  }
  func.func @transform_5(%arg0: i32) -> (i32, i32) {
    %c0_i32 = arith.constant 0 : i32
    %c0_i32_0 = arith.constant 0 : i32
    %c0_i32_1 = arith.constant 0 : i32
    return %c0_i32, %c0_i32_0 : i32, i32
  }
}

</mosaic_0001>

<bundles_post_ra>
// kernel: high_block_forward.1
= control target key start
LH: loop header
LB: loop body
LE: loop exit
PB: predicated region body
PF: predicated region fallthrough
CT: control target
= control target key end

     0   :  { %v2322_v12 = vmov 0   ;;  %v2323_v27 = vmov 1   ;;  %s2324_s29 = smov 1   ;;  %s2325_s30 = smov 17   ;;  %v3934_v52 = vmov 0.0   ;;  %v110_v57 = vlaneseq  ;;  %s3928_s0 = inlined_call_operand.vmem [shape: f32[16,256], index: 0, kind: input, shape index: {}]   ;;  %s3929_s2 = inlined_call_operand.vmem [shape: f32[112,2], index: 2, kind: input, shape index: {}]   ;;  %s3930_s1 = inlined_call_operand.vmem [shape: f32[8,256], index: 1, kind: input, shape index: {}]   ;;  %s3931_s3 = inlined_call_operand.vmem [shape: f32[32,72], index: 3, kind: input, shape index: {}]   ;;  %s3932_s4 = inlined_call_operand.vmem [shape: f32[32,288], index: 4, kind: input, shape index: {}]   ;;  %s3933_s5 = inlined_call_operand.vmem [shape: f32[64,256], index: 5, kind: output, shape index: {}]  }
   0x1   :  { %v26_v0 = vld [vmem:[%s3928_s0] sm:$0xff]  ;;  %v2369_v1 = vld [vmem:[%s3928_s0 + $0x8] sm:$0xff]  ;;  %v2374_v2 = vld [vmem:[%s3928_s0 + $0x10] sm:$0xff]  ;;  %2291 = vset.pattern.permute.xlu1 %v2322_v12  ;;  %2292 = vset.pattern.permute.xlu0 %v2323_v27  ;;  %s2326_s6 = smov 16   ;;  %s2327_s7 = smov 15   ;;  %vm328_vm8 = vcmask 588800  }
   0x2   :  { %v36_v3 = vadd.f32 %v2369_v1, %v26_v0  ;;  %v32_v4 = vmul.f32 %v26_v0, %v26_v0  ;;  %v33_v5 = vmul.f32 %v2369_v1, %v2369_v1  ;;  %v2382_v6 = vld [vmem:[%s3928_s0 + $0x18] sm:$0xff]  ;;  %v34_v7 = vmul.f32 %v2374_v2, %v2374_v2  ;;  %v30_v28 = vld [vmem:[%s3929_s2] sm:$0xff]  ;;  %v31_v31 = vld [vmem:[%s3929_s2 + $0x8] sm:$0xff]  ;;  %s2328_s8 = smov 127   ;;  %s2329_s9 = smov 113   ;;  %405 = vmatprep.mubr.f32.mxu0 %v3934_v52 }
   0x3   :  { %v35_v8 = vmul.f32 %v2382_v6, %v2382_v6  ;;  %v39_v10 = vadd.f32 %v2382_v6, %v2374_v2  ;;  %s2330_s10 = smov 112   ;;  %494 = vmatprep.mubr.f32.mxu1 %v3934_v52  ;;  %s2332_s11 = smov 111   ;;  %v22_v53 = vld [vmem:[%s3929_s2 + $0x50] sm:$0xff]  ;;  %v23_v54 = vld [vmem:[%s3929_s2 + $0x58] sm:$0xff]  ;;  %v24_v55 = vld [vmem:[%s3929_s2 + $0x60] sm:$0xff]  ;;  %v2489_v59 = vshrl.u32 %v110_v57, 7 }
   0x4   :  { %37 = vadd.xlane.f32.xlu0 %v36_v3  ;;  %v42_v9 = vadd.f32 %v33_v5, %v32_v4  ;;  %v25_v56 = vld [vmem:[%s3929_s2 + $0x68] sm:$0xff]  ;;  %v2491_v61 = vand.u32 127, %v110_v57  ;;  %vm1651_vm9 = vcmask 261120  }
   0x5   :  { %v45_v11 = vadd.f32 %v35_v8, %v34_v7  ;;  %v119_v63 = vsub.s32 0, %v2489_v59 }
   0x6   :  { %43 = vadd.xlane.f32.xlu1 %v42_v9  ;;  %vm112_vm0 = vcmp.lt.s32.totalorder %v2491_v61, 17  ;;  %vm137_vm1 = vcmp.lt.s32.totalorder %v2491_v61, 16  ;;  %vm162_vm2 = vcmp.lt.s32.totalorder %v2491_v61, 15  ;;  %vm187_vm3 = vcmp.lt.s32.totalorder %v2491_v61, 1 }
   0x7   :  { %vm212_vm4 = vcmp.lt.s32.totalorder %v2491_v61, 127  ;;  %vm237_vm5 = vcmp.lt.s32.totalorder %v2491_v61, 113  ;;  %vm262_vm6 = vcmp.lt.s32.totalorder %v2491_v61, 112  ;;  %vm287_vm7 = vcmp.lt.s32.totalorder %v2491_v61, 111 }
   0x8   :  { %40 = vadd.xlane.f32.xlu0 %v39_v10 }
   0xa   :  { %46 = vadd.xlane.f32.xlu1 %v45_v11 }
  0x91   :  { %v38_v13 = vpop.xlane.xlu0 %37 }
  0x92   :  { %v48_v14 = vmul.f32 0.00390625, %v38_v13 }
  0x93   :  { %v44_v15 = vpop.xlane.xlu1 %43 }
  0x94   :  { %v52_v16 = vmul.f32 %v48_v14, %v48_v14  ;;  %v50_v17 = vmul.f32 0.00390625, %v44_v15 }
  0x95   :  { %v41_v18 = vpop.xlane.xlu0 %40 }
  0x96   :  { %v54_v19 = vsub.f32 %v50_v17, %v52_v16  ;;  %v49_v20 = vmul.f32 0.00390625, %v41_v18 }
  0x97   :  { %v47_v21 = vpop.xlane.xlu1 %46 }
  0x98   :  { %v56_v22 = vadd.f32 1e-05, %v54_v19  ;;  %v53_v23 = vmul.f32 %v49_v20, %v49_v20  ;;  %v51_v24 = vmul.f32 0.00390625, %v47_v21 }
  0x9a   :  { %2298 = vrsqrt.f32 %v56_v22  ;;  %v55_v25 = vsub.f32 %v51_v24, %v53_v23 }
  0x9c   :  { %v57_v26 = vadd.f32 1e-05, %v55_v25 }
  0x9e   :  { %2300 = vrsqrt.f32 %v57_v26 }
  0xa4   :  { %v2299_v29 = vpop.eup %2298 }
  0xa5   :  { %v60_v30 = vmul.f32 %v2299_v29, %v30_v28 }
  0xa7   :  { %v62_v32 = vmul.f32 %v60_v30, %v48_v14 }
  0xa8   :  { %v2301_v33 = vpop.eup %2300 }
  0xa9   :  { %66 = vrot.lane.b32.xlu0 %v62_v32, %s2324_s29  ;;  %v61_v34 = vmul.f32 %v2301_v33, %v31_v31 }
  0xab   :  { %v63_v35 = vmul.f32 %v61_v34, %v49_v20 }
  0xad   :  { %68 = vrot.lane.b32.xlu1 %v63_v35, %s2324_s29 }
  0xb1   :  { %76 = vperm.xlu1 %2291, %v60_v30  }
  0xb5   :  { %81 = vperm.xlu1 %2291, %v61_v34  }
  0xb9   :  { %2293 = vset.pattern.permute.xlu1 %v2323_v27 }
 0x11b   :  { %v67_v36 = vpop.permute.xlu0 %66 }
 0x11c   :  { %v72_v37 = vsub.f32 %v30_v28, %v67_v36  ;;  %v169_v36 = vsub.s32 2, %v2489_v59 }
 0x11e   :  { %90 = vperm.xlu0 %2292, %v72_v37   ;;  %v194_v37 = vsub.s32 3, %v2489_v59 }
 0x11f   :  { %v69_v38 = vpop.permute.xlu1 %68 }
 0x120   :  { %v73_v39 = vsub.f32 %v31_v31, %v69_v38 }
 0x122   :  { %95 = vperm.xlu1 %2293, %v73_v39   ;;  %2295 = vset.pattern.permute.xlu0 %v2322_v12 }
 0x126   :  { %2294 = vset.pattern.permute.xlu1 %v2322_v12 }
 0x130   :  { %v77_v40 = vpop.permute.xlu1 %76 }
 0x131   :  { %v84_v41 = vmul.f32 %v77_v40, %v26_v0  ;;  %v85_v45 = vmul.f32 %v77_v40, %v2369_v1  ;;  %v2497_v0 = vld [vmem:[%s3930_s1 + $0x8] sm:$0xff]  ;;  %v144_v1 = vsub.s32 1, %v2489_v59 }
 0x132   :  { %v2507_v5 = vrot.slane %v2497_v0, %v119_v63 }
 0x134   :  { %v82_v42 = vpop.permute.xlu1 %81 }
 0x135   :  { %v86_v46 = vmul.f32 %v82_v42, %v2374_v2  ;;  %v87_v50 = vmul.f32 %v82_v42, %v2382_v6  ;;  %v2503_v2 = vld [vmem:[%s3930_s1] sm:$0xff]  ;;  %v2511_v6 = vrot.slane %v2497_v0, %v144_v1 }
 0x136   :  { %v2514_v7 = vrot.slane %v2503_v2, %v119_v63  ;;  %v2517_v8 = vrot.slane %v2503_v2, %v144_v1  ;;  %v2547_v40 = vrot.slane %v2503_v2, %v169_v36  ;;  %v2554_v42 = vrot.slane %v2503_v2, %v194_v37 }
 0x138   :  { %3992 = vst [vmem:[#allocation3_spill] sm:$0xff] %v2554_v42 }
 0x19d   :  { %v91_v43 = vpop.permute.xlu0 %90 }
 0x19e   :  { %v2400_v44 = vadd.f32 %v91_v43, %v84_v41  ;;  %v2406_v48 = vadd.f32 %v91_v43, %v85_v45  ;;  %v2550_v41 = vrot.slane %v2497_v0, %v169_v36  ;;  %v2557_v43 = vrot.slane %v2497_v0, %v194_v37 }
 0x1a0   :  { %102 = vrot.lane.b32.xlu1 %v2400_v44, %s2325_s30 }
 0x1a1   :  { %v96_v47 = vpop.permute.xlu1 %95 }
 0x1a2   :  { %v2408_v49 = vadd.f32 %v96_v47, %v86_v46  ;;  %v2415_v51 = vadd.f32 %v96_v47, %v87_v50 }
 0x1a4   :  { %106 = vrot.lane.b32.xlu1 %v2406_v48, %s2325_s30  ;;  %104 = vrot.lane.b32.xlu0 %v2408_v49, %s2325_s30 }
 0x1a8   :  { %129 = vrot.lane.b32.xlu1 %v2400_v44, %s2326_s6  ;;  %108 = vrot.lane.b32.xlu0 %v2415_v51, %s2325_s30 }
 0x1ac   :  { %133 = vrot.lane.b32.xlu1 %v2406_v48, %s2326_s6  ;;  %131 = vrot.lane.b32.xlu0 %v2408_v49, %s2326_s6 }
 0x1b0   :  { %154 = vrot.lane.b32.xlu1 %v2400_v44, %s2327_s7  ;;  %135 = vrot.lane.b32.xlu0 %v2415_v51, %s2326_s6 }
 0x1b4   :  { %158 = vrot.lane.b32.xlu1 %v2406_v48, %s2327_s7  ;;  %156 = vrot.lane.b32.xlu0 %v2408_v49, %s2327_s7 }
 0x1b8   :  { %179 = vrot.lane.b32.xlu1 %v2400_v44, %s2324_s29  ;;  %160 = vrot.lane.b32.xlu0 %v2415_v51, %s2327_s7 }
 0x1bc   :  { %183 = vrot.lane.b32.xlu1 %v2406_v48, %s2324_s29  ;;  %181 = vrot.lane.b32.xlu0 %v2408_v49, %s2324_s29 }
 0x1c0   :  { %204 = vrot.lane.b32.xlu1 %v2400_v44, %s2328_s8  ;;  %185 = vrot.lane.b32.xlu0 %v2415_v51, %s2324_s29 }
 0x1c4   :  { %208 = vrot.lane.b32.xlu1 %v2406_v48, %s2328_s8  ;;  %206 = vrot.lane.b32.xlu0 %v2408_v49, %s2328_s8 }
 0x1c8   :  { %229 = vrot.lane.b32.xlu1 %v2400_v44, %s2329_s9  ;;  %210 = vrot.lane.b32.xlu0 %v2415_v51, %s2328_s8 }
 0x1cc   :  { %233 = vrot.lane.b32.xlu1 %v2406_v48, %s2329_s9  ;;  %231 = vrot.lane.b32.xlu0 %v2408_v49, %s2329_s9 }
 0x1d0   :  { %254 = vrot.lane.b32.xlu1 %v2400_v44, %s2330_s10  ;;  %235 = vrot.lane.b32.xlu0 %v2415_v51, %s2329_s9 }
 0x1d4   :  { %258 = vrot.lane.b32.xlu1 %v2406_v48, %s2330_s10  ;;  %256 = vrot.lane.b32.xlu0 %v2408_v49, %s2330_s10 }
 0x1d8   :  { %279 = vrot.lane.b32.xlu1 %v2400_v44, %s2332_s11  ;;  %260 = vrot.lane.b32.xlu0 %v2415_v51, %s2330_s10 }
 0x1dc   :  { %283 = vrot.lane.b32.xlu1 %v2406_v48, %s2332_s11  ;;  %281 = vrot.lane.b32.xlu0 %v2408_v49, %s2332_s11 }
 0x1e0   :  { %285 = vrot.lane.b32.xlu0 %v2415_v51, %s2332_s11  ;;  %310 = vperm.xlu1 %2294, %v22_v53  }
 0x1e4   :  { %315 = vperm.xlu0 %2295, %v23_v54   ;;  %320 = vperm.xlu1 %2294, %v24_v55   ;;  %v219_v55 = vsub.s32 4, %v2489_v59 }
 0x1e8   :  { %325 = vperm.xlu1 %2294, %v25_v56  }
 0x212   :  { %v103_v58 = vpop.permute.xlu1 %102 }
 0x216   :  { %v105_v60 = vpop.permute.xlu0 %104  ;;  %v107_v62 = vpop.permute.xlu1 %106 }
 0x217   :  { %v115_v9 = vsel %vm112_vm0, %v107_v62, %v103_v58  ;;  %v113_v10 = vsel %vm112_vm0, %v103_v58, %v107_v62 }
 0x218   :  { %v126_v15 = vmul.f32 %v2507_v5, %v113_v10  ;;  %v125_v17 = vmul.f32 %v2514_v7, %v115_v9 }
 0x21a   :  { %v109_v3 = vpop.permute.xlu0 %108  ;;  %v130_v4 = vpop.permute.xlu1 %129 }
 0x21b   :  { %v116_v19 = vsel %vm112_vm0, %v109_v3, %v105_v60  ;;  %v114_v20 = vsel %vm112_vm0, %v105_v60, %v109_v3 }
 0x21c   :  { %v128_v28 = vmul.f32 %v2507_v5, %v114_v20  ;;  %v127_v30 = vmul.f32 %v2514_v7, %v116_v19 }
 0x21e   :  { %v132_v11 = vpop.permute.xlu0 %131  ;;  %v134_v12 = vpop.permute.xlu1 %133 }
 0x21f   :  { %v140_v13 = vsel %vm137_vm1, %v134_v12, %v130_v4  ;;  %v138_v14 = vsel %vm137_vm1, %v130_v4, %v134_v12  ;;  %v2582_v12 = vrot.slane %v2503_v2, %v219_v55 }
 0x220   :  { %v151_v16 = vmul.f32 %v2511_v6, %v138_v14  ;;  %v150_v18 = vmul.f32 %v2517_v8, %v140_v13  ;;  %v2585_v13 = vrot.slane %v2497_v0, %v219_v55 }
 0x221   :  { %3993 = vst [vmem:[#allocation4_spill] sm:$0xff] %v2582_v12 }
 0x222   :  { %v136_v21 = vpop.permute.xlu0 %135  ;;  %v155_v22 = vpop.permute.xlu1 %154  ;;  %v2072_v23 = vpack.c.bf16 %v151_v16, %v126_v15  ;;  %v2074_v24 = vpack.c.bf16 %v150_v18, %v125_v17  ;;  %3994 = vst [vmem:[#allocation5_spill] sm:$0xff] %v2585_v13 }
 0x223   :  { %v141_v25 = vsel %vm137_vm1, %v136_v21, %v132_v11  ;;  %v139_v26 = vsel %vm137_vm1, %v132_v11, %v136_v21 }
 0x224   :  { %2073 = vmatprep.subr.bf16.mxu0 %v2072_v23  ;;  %v153_v29 = vmul.f32 %v2511_v6, %v139_v26  ;;  %v152_v31 = vmul.f32 %v2517_v8, %v141_v25 }
 0x225   :  { %2075 = vmatpush1.bf16.msra.mxu0 %v2074_v24 }
 0x226   :  { %v157_v32 = vpop.permute.xlu0 %156  ;;  %v159_v33 = vpop.permute.xlu1 %158  ;;  %v2088_v34 = vpack.c.bf16 %v153_v29, %v128_v28  ;;  %v2090_v35 = vpack.c.bf16 %v152_v31, %v127_v30 }
 0x227   :  { %v163_v45 = vsel %vm162_vm2, %v155_v22, %v159_v33  ;;  %v165_v46 = vsel %vm162_vm2, %v159_v33, %v155_v22 }
 0x228   :  { %2089 = vmatprep.subr.bf16.mxu1 %v2088_v34  ;;  %v175_v56 = vmul.f32 %v2547_v40, %v165_v46  ;;  %v176_v57 = vmul.f32 %v2550_v41, %v163_v45 }
 0x229   :  { %2091 = vmatpush1.bf16.msra.mxu1 %v2090_v35 }
 0x22a   :  { %v161_v38 = vpop.permute.xlu0 %160  ;;  %v180_v39 = vpop.permute.xlu1 %179 }
 0x22b   :  { %v164_v62 = vsel %vm162_vm2, %v157_v32, %v161_v38  ;;  %v166_v63 = vsel %vm162_vm2, %v161_v38, %v157_v32  ;;  %v269_v38 = vsub.s32 6, %v2489_v59 }
 0x22c   :  { %v177_v14 = vmul.f32 %v2547_v40, %v166_v63  ;;  %v178_v15 = vmul.f32 %v2550_v41, %v164_v62 }
 0x22e   :  { %v182_v47 = vpop.permute.xlu0 %181  ;;  %v184_v50 = vpop.permute.xlu1 %183 }
 0x22f   :  { %v188_v53 = vsel %vm187_vm3, %v180_v39, %v184_v50  ;;  %v190_v54 = vsel %vm187_vm3, %v184_v50, %v180_v39 }
 0x230   :  { %v200_v58 = vmul.f32 %v2554_v42, %v190_v54  ;;  %v201_v60 = vmul.f32 %v2557_v43, %v188_v53 }
 0x232   :  { %v186_v1 = vpop.permute.xlu0 %185  ;;  %v205_v3 = vpop.permute.xlu1 %204  ;;  %v2076_v4 = vpack.c.bf16 %v201_v60, %v176_v57  ;;  %v2078_v9 = vpack.c.bf16 %v200_v58, %v175_v56  ;;  %v294_v58 = vsub.s32 7, %v2489_v59 }
 0x233   :  { %v189_v10 = vsel %vm187_vm3, %v182_v47, %v186_v1  ;;  %v191_v11 = vsel %vm187_vm3, %v186_v1, %v182_v47 }
 0x234   :  { %v202_v16 = vmul.f32 %v2554_v42, %v191_v11  ;;  %v203_v17 = vmul.f32 %v2557_v43, %v189_v10  ;;  %2077 = vmatprep.subr.bf16.mxu0 %v2076_v4 }
 0x235   :  { %2079 = vmatpush1.bf16.msra.mxu0 %v2078_v9 }
 0x236   :  { %v207_v18 = vpop.permute.xlu0 %206  ;;  %v209_v19 = vpop.permute.xlu1 %208  ;;  %v2092_v20 = vpack.c.bf16 %v203_v17, %v178_v15  ;;  %v2094_v21 = vpack.c.bf16 %v202_v16, %v177_v14  ;;  %v2646_v16 = vrot.slane %v2497_v0, %v294_v58  ;;  %v2649_v17 = vrot.slane %v2503_v2, %v294_v58 }
 0x237   :  { %v213_v22 = vsel %vm212_vm4, %v205_v3, %v209_v19  ;;  %v215_v23 = vsel %vm212_vm4, %v209_v19, %v205_v3 }
 0x238   :  { %v225_v24 = vmul.f32 %v2582_v12, %v213_v22  ;;  %v226_v25 = vmul.f32 %v2585_v13, %v215_v23  ;;  %2093 = vmatprep.subr.bf16.mxu1 %v2092_v20  ;;  %3999 = vst [vmem:[#allocation10_spill] sm:$0xff] %v2646_v16  ;;  %4000 = vst [vmem:[#allocation11_spill] sm:$0xff] %v2649_v17 }
 0x239   :  { %2095 = vmatpush1.bf16.msra.mxu1 %v2094_v21 }
 0x23a   :  { %v211_v26 = vpop.permute.xlu0 %210  ;;  %v230_v28 = vpop.permute.xlu1 %229  ;;  %v2080_v29 = vpack.c.bf16 %v226_v25, %v2406_v48  ;;  %v2082_v30 = vpack.c.bf16 %v225_v24, %v2400_v44  ;;  %v244_v44 = vsub.s32 5, %v2489_v59 }
 0x23b   :  { %v214_v31 = vsel %vm212_vm4, %v207_v18, %v211_v26  ;;  %v216_v32 = vsel %vm212_vm4, %v211_v26, %v207_v18 }
 0x23c   :  { %v227_v33 = vmul.f32 %v2582_v12, %v214_v31  ;;  %v228_v34 = vmul.f32 %v2585_v13, %v216_v32  ;;  %2081 = vmatprep.subr.bf16.mxu0 %v2080_v29  ;;  %v2611_v46 = vrot.slane %v2503_v2, %v244_v44  ;;  %v2614_v47 = vrot.slane %v2497_v0, %v244_v44  ;;  %v304_v29 = vld [vmem:[%s3931_s3] sm:$0xff] }
 0x23d   :  { %2083 = vmatpush1.bf16.msra.mxu0 %v2082_v30 }
 0x23e   :  { %v232_v35 = vpop.permute.xlu0 %231  ;;  %v234_v36 = vpop.permute.xlu1 %233  ;;  %v2096_v37 = vpack.c.bf16 %v228_v34, %v2415_v51  ;;  %v2098_v48 = vpack.c.bf16 %v227_v33, %v2408_v49  ;;  %3995 = vst [vmem:[#allocation6_spill] sm:$0xff] %v2611_v46  ;;  %3996 = vst [vmem:[#allocation7_spill] sm:$0xff] %v2614_v47  ;;  %v2618_v49 = vrot.slane %v2503_v2, %v269_v38 }
 0x23f   :  { %v2621_v51 = vrot.slane %v2497_v0, %v269_v38  ;;  %v238_v50 = vsel %vm237_vm5, %v230_v28, %v234_v36  ;;  %v240_v53 = vsel %vm237_vm5, %v234_v36, %v230_v28  ;;  %v306_v36 = vld [vmem:[%s3931_s3 + $0x10] sm:$0xff] }
 0x240   :  { %2097 = vmatprep.subr.bf16.mxu1 %v2096_v37  ;;  %3997 = vst [vmem:[#allocation8_spill] sm:$0xff] %v2618_v49  ;;  %v250_v60 = vmul.f32 %v2611_v46, %v238_v50  ;;  %v251_v62 = vmul.f32 %v2614_v47, %v240_v53  ;;  %v307_v37 = vld [vmem:[%s3931_s3 + $0x18] sm:$0xff] }
 0x241   :  { %2099 = vmatpush1.bf16.msra.mxu1 %v2098_v48  ;;  %3998 = vst [vmem:[#allocation9_spill] sm:$0xff] %v2621_v51 }
 0x242   :  { %v236_v39 = vpop.permute.xlu0 %235  ;;  %v255_v45 = vpop.permute.xlu1 %254 }
 0x243   :  { %v239_v3 = vsel %vm237_vm5, %v232_v35, %v236_v39  ;;  %v241_v4 = vsel %vm237_vm5, %v236_v39, %v232_v35  ;;  %v305_v35 = vld [vmem:[%s3931_s3 + $0x8] sm:$0xff] }
 0x244   :  { %v252_v18 = vmul.f32 %v2611_v46, %v239_v3  ;;  %v253_v19 = vmul.f32 %v2614_v47, %v241_v4 }
 0x246   :  { %v257_v54 = vpop.permute.xlu0 %256  ;;  %v259_v55 = vpop.permute.xlu1 %258 }
 0x247   :  { %v263_v56 = vsel %vm262_vm6, %v255_v45, %v259_v55  ;;  %v265_v57 = vsel %vm262_vm6, %v259_v55, %v255_v45 }
 0x248   :  { %v275_v63 = vmul.f32 %v2618_v49, %v263_v56  ;;  %v276_v1 = vmul.f32 %v2621_v51, %v265_v57 }
 0x24a   :  { %v261_v9 = vpop.permute.xlu0 %260  ;;  %v280_v10 = vpop.permute.xlu1 %279  ;;  %v2084_v11 = vpack.c.bf16 %v276_v1, %v251_v62  ;;  %v2086_v14 = vpack.c.bf16 %v275_v63, %v250_v60 }
 0x24b   :  { %v264_v59 = vsel %vm262_vm6, %v257_v54, %v261_v9  ;;  %v266_v15 = vsel %vm262_vm6, %v261_v9, %v257_v54 }
 0x24c   :  { %v277_v20 = vmul.f32 %v2618_v49, %v264_v59  ;;  %v278_v21 = vmul.f32 %v2621_v51, %v266_v15  ;;  %2085 = vmatprep.subr.bf16.mxu0 %v2084_v11 }
 0x24d   :  { %2087 = vmatpush1.bf16.msra.mxu0 %v2086_v14 }
 0x24e   :  { %v282_v22 = vpop.permute.xlu0 %281  ;;  %v284_v23 = vpop.permute.xlu1 %283  ;;  %v2100_v24 = vpack.c.bf16 %v278_v21, %v253_v19  ;;  %v2102_v25 = vpack.c.bf16 %v277_v20, %v252_v18 }
 0x24f   :  { %v288_v0 = vsel %vm287_vm7, %v280_v10, %v284_v23  ;;  %v290_v2 = vsel %vm287_vm7, %v284_v23, %v280_v10 }
 0x250   :  { %2101 = vmatprep.subr.bf16.mxu1 %v2100_v24  ;;  %v301_v26 = vmul.f32 %v2646_v16, %v290_v2  ;;  %v300_v28 = vmul.f32 %v2649_v17, %v288_v0 }
 0x251   :  { %2103 = vmatpush1.bf16.msra.mxu1 %v2102_v25 }
 0x252   :  { %v286_v30 = vpop.permute.xlu0 %285  ;;  %357 = vmatprep.subr.mxu0 %v301_v26 }
 0x253   :  { %v289_v31 = vsel %vm287_vm7, %v282_v22, %v286_v30  ;;  %v291_v32 = vsel %vm287_vm7, %v286_v30, %v282_v22  ;;  %358 = vmatpush1.msra.mxu0 %v300_v28 }
 0x254   :  { %2056 = vmatmul.mubr.msk.f32.vlgmr.msra.gmra.mrb[0].mxu0 %vm328_vm8, %v304_v29  ;;  %v303_v33 = vmul.f32 %v2646_v16, %v291_v32  ;;  %v302_v34 = vmul.f32 %v2649_v17, %v289_v31 }
 0x255   :  { %411 = vmatprep.mubr.f32.mxu0 %v3934_v52 }
 0x256   :  { %446 = vmatprep.subr.mxu1 %v303_v33 }
 0x257   :  { %447 = vmatpush1.msra.mxu1 %v302_v34 }
 0x258   :  { %2057 = vmatmul.mubr.msk.f32.gmra.mrb[2].mxu0 %vm328_vm8, %v305_v35  ;;  %2060 = vmatmul.mubr.msk.f32.vlgmr.msra.gmra.mrb[0].mxu1 %vm328_vm8, %v304_v29 }
 0x259   :  { %417 = vmatprep.mubr.f32.mxu0 %v3934_v52  ;;  %500 = vmatprep.mubr.f32.mxu1 %v3934_v52 }
 0x25c   :  { %2058 = vmatmul.mubr.msk.f32.gmra.mrb[4].mxu0 %vm328_vm8, %v306_v36  ;;  %2061 = vmatmul.mubr.msk.f32.gmra.mrb[2].mxu1 %vm328_vm8, %v305_v35 }
 0x25d   :  { %423 = vmatprep.mubr.f32.mxu0 %v3934_v52  ;;  %506 = vmatprep.mubr.f32.mxu1 %v3934_v52 }
 0x25f   :  { %v311_v48 = vpop.permute.xlu1 %310 }
 0x260   :  { %2059 = vmatmul.mubr.msk.f32.gmra.mrb[6].mxu0 %vm328_vm8, %v307_v37  ;;  %2062 = vmatmul.mubr.msk.f32.gmra.mrb[4].mxu1 %vm328_vm8, %v306_v36 }
 0x261   :  { %512 = vmatprep.mubr.f32.mxu1 %v3934_v52 }
 0x263   :  { %v316_v50 = vpop.permute.xlu0 %315  ;;  %v2693_v53 = vpop.permute.xlu1 %320 }
 0x264   :  { %2063 = vmatmul.mubr.msk.f32.gmra.mrb[6].mxu1 %vm328_vm8, %v307_v37 }
 0x267   :  { %v326_v2 = vpop.permute.xlu1 %325 }
 0x327   :  { %v407_v44 = vpop.f32.mrb[0].mxu0 }
 0x328   :  { %v408_v38 = vadd.f32 %v407_v44, %v311_v48  ;;  %v409_v39 = vpop.f32.mrb[1].mxu0 }
 0x329   :  { %v410_v45 = vadd.f32 %v409_v39, %v311_v48 }
 0x32a   :  { %v2695_v54 = vmax.f32 %v408_v38, 0.0 }
 0x32b   :  { %v2697_v55 = vmax.f32 %v410_v45, 0.0  ;;  %v413_v56 = vpop.f32.mrb[2].mxu0  ;;  %v496_v57 = vpop.f32.mrb[0].mxu1 }
 0x32c   :  { %v497_v58 = vadd.f32 %v496_v57, %v311_v48  ;;  %v498_v60 = vpop.f32.mrb[1].mxu1  ;;  %v415_v62 = vpop.f32.mrb[3].mxu0  ;;  %v414_v63 = vadd.f32 %v413_v56, %v316_v50  ;;  %v543_v22 = vmul.f32 %v2695_v54, %v2695_v54 }
 0x32d   :  { %v499_v1 = vadd.f32 %v498_v60, %v311_v48  ;;  %v416_v3 = vadd.f32 %v415_v62, %v316_v50  ;;  %v559_v4 = vadd.f32 %v2697_v55, %v2695_v54  ;;  %v544_v0 = vmul.f32 %v2697_v55, %v2697_v55 }
 0x32e   :  { %v2701_v9 = vmax.f32 %v497_v58, 0.0  ;;  %v2703_v10 = vmax.f32 %v414_v63, 0.0 }
 0x32f   :  { %v2705_v11 = vmax.f32 %v499_v1, 0.0  ;;  %v2707_v14 = vmax.f32 %v416_v3, 0.0  ;;  %v419_v59 = vpop.f32.mrb[4].mxu0  ;;  %560 = vadd.xlane.f32.xlu0 %v559_v4  ;;  %v502_v15 = vpop.f32.mrb[2].mxu1  ;;  %v583_v38 = vadd.f32 %v544_v0, %v543_v22 }
 0x330   :  { %v421_v18 = vpop.f32.mrb[5].mxu0  ;;  %v503_v19 = vadd.f32 %v502_v15, %v316_v50  ;;  %v504_v20 = vpop.f32.mrb[3].mxu1  ;;  %v545_v21 = vmul.f32 %v2703_v10, %v2703_v10  ;;  %v551_v36 = vmul.f32 %v2701_v9, %v2701_v9  ;;  %v420_v56 = vadd.f32 %v419_v59, %v2693_v53 }
 0x331   :  { %v505_v23 = vadd.f32 %v504_v20, %v316_v50  ;;  %v562_v24 = vadd.f32 %v2707_v14, %v2703_v10  ;;  %v571_v25 = vadd.f32 %v2705_v11, %v2701_v9  ;;  %v546_v28 = vmul.f32 %v2707_v14, %v2707_v14 }
 0x332   :  { %v2719_v26 = vmax.f32 %v503_v19, 0.0  ;;  %v552_v37 = vmul.f32 %v2705_v11, %v2705_v11  ;;  %v422_v57 = vadd.f32 %v421_v18, %v2693_v53  ;;  %v2739_v4 = vmax.f32 %v420_v56, 0.0 }
 0x333   :  { %v2723_v29 = vmax.f32 %v505_v23, 0.0  ;;  %v425_v30 = vpop.f32.mrb[6].mxu0  ;;  %v508_v31 = vpop.f32.mrb[4].mxu1  ;;  %563 = vadd.xlane.f32.xlu1 %v562_v24  ;;  %572 = vadd.xlane.f32.xlu0 %v571_v25  ;;  %v586_v34 = vadd.f32 %v546_v28, %v545_v21 }
 0x334   :  { %v427_v32 = vpop.f32.mrb[7].mxu0  ;;  %v510_v33 = vpop.f32.mrb[5].mxu1  ;;  %v553_v35 = vmul.f32 %v2719_v26, %v2719_v26  ;;  %v426_v48 = vadd.f32 %v425_v30, %v326_v2  ;;  %v595_v60 = vadd.f32 %v552_v37, %v551_v36  ;;  %v2741_v15 = vmax.f32 %v422_v57, 0.0 }
 0x335   :  { %v428_v44 = vadd.f32 %v427_v32, %v326_v2  ;;  %v554_v39 = vmul.f32 %v2723_v29, %v2723_v29  ;;  %v509_v19 = vadd.f32 %v508_v31, %v2693_v53  ;;  %v511_v59 = vadd.f32 %v510_v33, %v2693_v53 }
 0x336   :  { %v2735_v62 = vmax.f32 %v426_v48, 0.0  ;;  %v574_v21 = vadd.f32 %v2723_v29, %v2719_v26  ;;  %v565_v24 = vadd.f32 %v2741_v15, %v2739_v4  ;;  %v547_v28 = vmul.f32 %v2739_v4, %v2739_v4 }
 0x337   :  { %v514_v45 = vpop.f32.mrb[6].mxu1  ;;  %587 = vadd.xlane.f32.xlu1 %v586_v34  ;;  %584 = vadd.xlane.f32.xlu0 %v583_v38  ;;  %v598_v50 = vadd.f32 %v554_v39, %v553_v35  ;;  %v2737_v63 = vmax.f32 %v428_v44, 0.0  ;;  %v2753_v23 = vmax.f32 %v509_v19, 0.0  ;;  %v2757_v25 = vmax.f32 %v511_v59, 0.0 }
 0x338   :  { %v516_v58 = vpop.f32.mrb[7].mxu1  ;;  %v515_v1 = vadd.f32 %v514_v45, %v326_v2  ;;  %v549_v0 = vmul.f32 %v2735_v62, %v2735_v62  ;;  %v548_v30 = vmul.f32 %v2741_v15, %v2741_v15 }
 0x339   :  { %v517_v3 = vadd.f32 %v516_v58, %v326_v2  ;;  %v568_v22 = vadd.f32 %v2737_v63, %v2735_v62  ;;  %v550_v2 = vmul.f32 %v2737_v63, %v2737_v63  ;;  %v577_v31 = vadd.f32 %v2757_v25, %v2753_v23 }
 0x33a   :  { %v2745_v20 = vmax.f32 %v515_v1, 0.0  ;;  %v589_v35 = vadd.f32 %v548_v30, %v547_v28  ;;  %v555_v37 = vmul.f32 %v2753_v23, %v2753_v23  ;;  %v556_v48 = vmul.f32 %v2757_v25, %v2757_v25 }
 0x33b   :  { %599 = vadd.xlane.f32.xlu1 %v598_v50  ;;  %596 = vadd.xlane.f32.xlu0 %v595_v60  ;;  %v2747_v18 = vmax.f32 %v517_v3, 0.0  ;;  %v592_v32 = vadd.f32 %v550_v2, %v549_v0 }
 0x33c   :  { %v557_v33 = vmul.f32 %v2745_v20, %v2745_v20  ;;  %v601_v44 = vadd.f32 %v556_v48, %v555_v37 }
 0x33d   :  { %v580_v53 = vadd.f32 %v2747_v18, %v2745_v20  ;;  %v558_v34 = vmul.f32 %v2747_v18, %v2747_v18 }
 0x33f   :  { %575 = vadd.xlane.f32.xlu0 %v574_v21  ;;  %569 = vadd.xlane.f32.xlu1 %v568_v22  ;;  %v604_v36 = vadd.f32 %v558_v34, %v557_v33 }
 0x343   :  { %566 = vadd.xlane.f32.xlu0 %v565_v24  ;;  %581 = vadd.xlane.f32.xlu1 %v580_v53 }
 0x347   :  { %578 = vadd.xlane.f32.xlu0 %v577_v31  ;;  %593 = vadd.xlane.f32.xlu1 %v592_v32 }
 0x34b   :  { %590 = vadd.xlane.f32.xlu0 %v589_v35  ;;  %605 = vadd.xlane.f32.xlu1 %v604_v36 }
 0x34f   :  { %602 = vadd.xlane.f32.xlu0 %v601_v44 }
 0x3bc   :  { %v561_v38 = vpop.xlane.xlu0 %560 }
 0x3bd   :  { %v607_v50 = vmul.f32 0.00390625, %v561_v38 }
 0x3bf   :  { %v623_v60 = vmul.f32 %v607_v50, %v607_v50 }
 0x3c0   :  { %v573_v39 = vpop.xlane.xlu0 %572  ;;  %v564_v45 = vpop.xlane.xlu1 %563 }
 0x3c1   :  { %v2779_v56 = vmul.f32 0.00390625, %v564_v45  ;;  %v611_v1 = vmul.f32 0.00390625, %v573_v39  ;;  %v2790_v45 = vld [vmem:[%s3929_s2 + $0x10] sm:$0xff] }
 0x3c3   :  { %v624_v19 = vmul.f32 %v2779_v56, %v2779_v56  ;;  %v627_v53 = vmul.f32 %v611_v1, %v611_v1 }
 0x3c4   :  { %v585_v57 = vpop.xlane.xlu0 %584  ;;  %v588_v58 = vpop.xlane.xlu1 %587 }
 0x3c5   :  { %v615_v3 = vmul.f32 0.00390625, %v585_v57  ;;  %v616_v21 = vmul.f32 0.00390625, %v588_v58 }
 0x3c7   :  { %v631_v59 = vsub.f32 %v615_v3, %v623_v60  ;;  %v632_v28 = vsub.f32 %v616_v21, %v624_v19 }
 0x3c8   :  { %v597_v22 = vpop.xlane.xlu0 %596  ;;  %v600_v24 = vpop.xlane.xlu1 %599 }
 0x3c9   :  { %v639_v0 = vadd.f32 1e-05, %v631_v59  ;;  %v619_v2 = vmul.f32 0.00390625, %v597_v22  ;;  %v640_v35 = vadd.f32 1e-05, %v632_v28  ;;  %v620_v36 = vmul.f32 0.00390625, %v600_v24 }
 0x3ca   :  { %v2796_v59 = vld [vmem:[%s3929_s2 + $0x30] sm:$0xff] }
 0x3cb   :  { %2302 = vrsqrt.f32 %v639_v0  ;;  %v635_v30 = vsub.f32 %v619_v2, %v627_v53 }
 0x3cc   :  { %v576_v31 = vpop.xlane.xlu0 %575  ;;  %v570_v32 = vpop.xlane.xlu1 %569 }
 0x3cd   :  { %v643_v33 = vadd.f32 1e-05, %v635_v30  ;;  %v2783_v34 = vmul.f32 0.00390625, %v576_v31  ;;  %v2798_v21 = vmul.f32 0.00390625, %v570_v32 }
 0x3cf   :  { %2304 = vrsqrt.f32 %v643_v33  ;;  %v628_v37 = vmul.f32 %v2783_v34, %v2783_v34  ;;  %v626_v33 = vmul.f32 %v2798_v21, %v2798_v21 }
 0x3d0   :  { %v567_v48 = vpop.xlane.xlu0 %566  ;;  %v582_v44 = vpop.xlane.xlu1 %581  ;;  %2306 = vrsqrt.f32 %v640_v35 }
 0x3d1   :  { %v636_v38 = vsub.f32 %v620_v36, %v628_v37  ;;  %v609_v60 = vmul.f32 0.00390625, %v567_v48  ;;  %v614_v32 = vmul.f32 0.00390625, %v582_v44 }
 0x3d3   :  { %v644_v39 = vadd.f32 1e-05, %v636_v38  ;;  %v625_v53 = vmul.f32 %v609_v60, %v609_v60 }
 0x3d4   :  { %v579_v57 = vpop.xlane.xlu0 %578  ;;  %v594_v3 = vpop.xlane.xlu1 %593 }
 0x3d5   :  { %v2303_v58 = vpop.eup %2302  ;;  %2308 = vrsqrt.f32 %v644_v39  ;;  %v613_v0 = vmul.f32 0.00390625, %v579_v57  ;;  %v618_v30 = vmul.f32 0.00390625, %v594_v3  ;;  %v2806_v57 = vld [vmem:[%s3929_s2 + $0x18] sm:$0xff] }
 0x3d6   :  { %v655_v19 = vmul.f32 %v2303_v58, %v2790_v45 }
 0x3d7   :  { %v629_v38 = vmul.f32 %v613_v0, %v613_v0 }
 0x3d8   :  { %713 = vperm.xlu0 %2295, %v655_v19   ;;  %v591_v22 = vpop.xlane.xlu0 %590  ;;  %v606_v35 = vpop.xlane.xlu1 %605  ;;  %v663_v3 = vmul.f32 %v655_v19, %v607_v50 }
 0x3d9   :  { %v2305_v24 = vpop.eup %2304  ;;  %v617_v2 = vmul.f32 0.00390625, %v591_v22  ;;  %v634_v22 = vsub.f32 %v618_v30, %v626_v33  ;;  %v537_v30 = vld [vmem:[%s3929_s2 + $0x20] sm:$0xff] }
 0x3da   :  { %v659_v28 = vmul.f32 %v2305_v24, %v2796_v59  ;;  %v2307_v48 = vpop.eup %2306  ;;  %v622_v24 = vmul.f32 0.00390625, %v606_v35 }
 0x3db   :  { %v633_v31 = vsub.f32 %v617_v2, %v625_v53  ;;  %v540_v2 = vld [vmem:[%s3929_s2 + $0x38] sm:$0xff] }
 0x3dc   :  { %733 = vperm.xlu0 %2295, %v659_v28   ;;  %v603_v36 = vpop.xlane.xlu0 %602  ;;  %v667_v37 = vmul.f32 %v659_v28, %v611_v1  ;;  %v656_v1 = vmul.f32 %v2307_v48, %v2806_v57  ;;  %v630_v28 = vmul.f32 %v614_v32, %v614_v32  ;;  %v541_v48 = vld [vmem:[%s3929_s2 + $0x40] sm:$0xff] }
 0x3dd   :  { %v641_v39 = vadd.f32 1e-05, %v633_v31  ;;  %v621_v58 = vmul.f32 0.00390625, %v603_v36  ;;  %v642_v36 = vadd.f32 1e-05, %v634_v22  ;;  %v538_v22 = vld [vmem:[%s3929_s2 + $0x28] sm:$0xff] }
 0x3de   :  { %687 = vrot.lane.b32.xlu1 %v667_v37, %s2324_s29  ;;  %v638_v52 = vsub.f32 %v622_v24, %v630_v28  ;;  %v664_v33 = vmul.f32 %v656_v1, %v2779_v56 }
 0x3df   :  { %2310 = vrsqrt.f32 %v641_v39  ;;  %v637_v53 = vsub.f32 %v621_v58, %v629_v38  ;;  %v2309_v44 = vpop.eup %2308 }
 0x3e0   :  { %679 = vrot.lane.b32.xlu0 %v663_v3, %s2324_s29  ;;  %v660_v50 = vmul.f32 %v2309_v44, %v540_v2  ;;  %v646_v19 = vadd.f32 1e-05, %v638_v52 }
 0x3e1   :  { %v645_v31 = vadd.f32 1e-05, %v637_v53 }
 0x3e2   :  { %718 = vperm.xlu1 %2294, %v656_v1   ;;  %v668_v38 = vmul.f32 %v660_v50, %v2783_v34  ;;  %v542_v34 = vld [vmem:[%s3929_s2 + $0x48] sm:$0xff] }
 0x3e3   :  { %2312 = vrsqrt.f32 %v645_v31 }
 0x3e4   :  { %2314 = vrsqrt.f32 %v642_v36 }
 0x3e5   :  { %2316 = vrsqrt.f32 %v646_v19 }
 0x3e6   :  { %738 = vperm.xlu1 %2294, %v660_v50  }
 0x3e9   :  { %v2311_v35 = vpop.eup %2310 }
 0x3ea   :  { %681 = vrot.lane.b32.xlu1 %v664_v33, %s2324_s29  ;;  %v657_v37 = vmul.f32 %v2311_v35, %v537_v30 }
 0x3ec   :  { %v665_v39 = vmul.f32 %v657_v37, %v609_v60 }
 0x3ed   :  { %v2313_v58 = vpop.eup %2312 }
 0x3ee   :  { %683 = vrot.lane.b32.xlu0 %v665_v39, %s2324_s29  ;;  %689 = vrot.lane.b32.xlu1 %v668_v38, %s2324_s29  ;;  %v661_v52 = vmul.f32 %v2313_v58, %v541_v48  ;;  %v2315_v56 = vpop.eup %2314 }
 0x3ef   :  { %v658_v24 = vmul.f32 %v2315_v56, %v538_v22  ;;  %v2317_v53 = vpop.eup %2316 }
 0x3f0   :  { %v669_v3 = vmul.f32 %v661_v52, %v613_v0  ;;  %v662_v60 = vmul.f32 %v2317_v53, %v542_v34 }
 0x3f1   :  { %v666_v0 = vmul.f32 %v658_v24, %v2798_v21 }
 0x3f2   :  { %691 = vrot.lane.b32.xlu0 %v669_v3, %s2324_s29  ;;  %723 = vperm.xlu1 %2294, %v657_v37   ;;  %v670_v1 = vmul.f32 %v662_v60, %v614_v32 }
 0x3f6   :  { %743 = vperm.xlu1 %2294, %v661_v52   ;;  %728 = vperm.xlu0 %2295, %v658_v24  }
 0x3fa   :  { %748 = vperm.xlu1 %2294, %v662_v60   ;;  %2296 = vset.pattern.permute.xlu0 %v2323_v27 }
 0x3fe   :  { %685 = vrot.lane.b32.xlu1 %v666_v0, %s2324_s29 }
 0x3ff   :  { %2297 = vset.pattern.permute.xlu1 %v2323_v27 }
 0x402   :  { %693 = vrot.lane.b32.xlu1 %v670_v1, %s2324_s29 }
 0x450   :  { %v688_v44 = vpop.permute.xlu1 %687 }
 0x451   :  { %v707_v28 = vsub.f32 %v2796_v59, %v688_v44 }
 0x453   :  { %789 = vperm.xlu1 %2297, %v707_v28  }
 0x457   :  { %v714_v31 = vpop.permute.xlu0 %713 }
 0x45b   :  { %v734_v36 = vpop.permute.xlu0 %733 }
 0x45f   :  { %v680_v50 = vpop.permute.xlu0 %679 }
 0x460   :  { %v703_v19 = vsub.f32 %v2790_v45, %v680_v50  ;;  %v760_v50 = vmul.f32 %v734_v36, %v2705_v11 }
 0x461   :  { %v719_v33 = vpop.permute.xlu1 %718 }
 0x462   :  { %769 = vperm.xlu0 %2296, %v703_v19  }
 0x463   :  { %v684_v35 = vpop.permute.xlu0 %683 }
 0x464   :  { %v705_v52 = vsub.f32 %v537_v30, %v684_v35  ;;  %v759_v30 = vmul.f32 %v734_v36, %v2701_v9 }
 0x465   :  { %v739_v21 = vpop.permute.xlu1 %738 }
 0x466   :  { %v761_v9 = vmul.f32 %v739_v21, %v2719_v26  ;;  %v762_v26 = vmul.f32 %v739_v21, %v2723_v29 }
 0x467   :  { %v692_v27 = vpop.permute.xlu0 %691 }
 0x468   :  { %v709_v39 = vsub.f32 %v541_v48, %v692_v27 }
 0x469   :  { %v682_v37 = vpop.permute.xlu1 %681 }
 0x46a   :  { %v704_v38 = vsub.f32 %v2806_v57, %v682_v37 }
 0x46c   :  { %774 = vperm.xlu1 %2297, %v704_v38  }
 0x46d   :  { %v690_v32 = vpop.permute.xlu1 %689 }
 0x46e   :  { %v708_v58 = vsub.f32 %v540_v2, %v690_v32  ;;  %v751_v2 = vmul.f32 %v714_v31, %v2695_v54 }
 0x470   :  { %799 = vperm.xlu1 %2297, %v709_v39   ;;  %794 = vperm.xlu0 %2296, %v708_v58  }
 0x471   :  { %v2840_v59 = vpop.permute.xlu1 %723 }
 0x472   :  { %v755_v32 = vmul.f32 %v2840_v59, %v2739_v4 }
 0x474   :  { %779 = vperm.xlu0 %2296, %v705_v52  }
 0x475   :  { %v2842_v3 = vpop.permute.xlu1 %743  ;;  %v2846_v60 = vpop.permute.xlu0 %728 }
 0x479   :  { %v2844_v45 = vpop.permute.xlu1 %748 }
 0x47d   :  { %v686_v56 = vpop.permute.xlu1 %685 }
 0x47e   :  { %v706_v24 = vsub.f32 %v538_v22, %v686_v56  ;;  %v752_v22 = vmul.f32 %v714_v31, %v2697_v55  ;;  %v763_v56 = vmul.f32 %v2842_v3, %v2753_v23 }
 0x480   :  { %784 = vperm.xlu1 %2297, %v706_v24  }
 0x481   :  { %v694_v53 = vpop.permute.xlu1 %693 }
 0x482   :  { %v710_v57 = vsub.f32 %v542_v34, %v694_v53  ;;  %v753_v34 = vmul.f32 %v719_v33, %v2703_v10  ;;  %v754_v10 = vmul.f32 %v719_v33, %v2707_v14 }
 0x484   :  { %804 = vperm.xlu0 %2296, %v710_v57  }
 0x4d2   :  { %v790_v1 = vpop.permute.xlu1 %789 }
 0x4d3   :  { %v2854_v44 = vadd.f32 %v790_v1, %v759_v30  ;;  %v2868_v35 = vadd.f32 %v790_v1, %v760_v50 }
 0x4d5   :  { %4002 = vst [vmem:[#allocation13_spill] sm:$0xff] %v2854_v44  ;;  %4005 = vst [vmem:[#allocation16_spill] sm:$0xff] %v2868_v35 }
 0x4e1   :  { %v770_v48 = vpop.permute.xlu0 %769 }
 0x4e2   :  { %v2849_v0 = vadd.f32 %v770_v48, %v751_v2  ;;  %v2860_v28 = vadd.f32 %v770_v48, %v752_v22  ;;  %v756_v2 = vmul.f32 %v2840_v59, %v2741_v15  ;;  %v757_v48 = vmul.f32 %v2846_v60, %v2735_v62 }
 0x4e4   :  { %4001 = vst [vmem:[#allocation12_spill] sm:$0xff] %v2849_v0  ;;  %823 = vrot.lane.b32.xlu1 %v2849_v0, %s2325_s30  ;;  %4003 = vst [vmem:[#allocation14_spill] sm:$0xff] %v2860_v28 }
 0x4e8   :  { %831 = vrot.lane.b32.xlu1 %v2854_v44, %s2325_s30 }
 0x4eb   :  { %v775_v54 = vpop.permute.xlu1 %774 }
 0x4ec   :  { %v2863_v19 = vadd.f32 %v775_v54, %v753_v34  ;;  %839 = vrot.lane.b32.xlu1 %v2860_v28, %s2325_s30  ;;  %v2879_v11 = vadd.f32 %v775_v54, %v754_v10 }
 0x4ee   :  { %4004 = vst [vmem:[#allocation15_spill] sm:$0xff] %v2863_v19  ;;  %825 = vrot.lane.b32.xlu0 %v2863_v19, %s2325_s30  ;;  %4007 = vst [vmem:[#allocation18_spill] sm:$0xff] %v2879_v11 }
 0x4ef   :  { %v795_v55 = vpop.permute.xlu0 %794  ;;  %v800_v14 = vpop.permute.xlu1 %799 }
 0x4f0   :  { %v2872_v31 = vadd.f32 %v795_v55, %v761_v9  ;;  %847 = vrot.lane.b32.xlu1 %v2868_v35, %s2325_s30  ;;  %v2886_v36 = vadd.f32 %v795_v55, %v762_v26  ;;  %v3008_v53 = vadd.f32 %v800_v14, %v763_v56  ;;  %v764_v55 = vmul.f32 %v2842_v3, %v2757_v25 }
 0x4f1   :  { %v765_v26 = vmul.f32 %v2844_v45, %v2745_v20 }
 0x4f2   :  { %4006 = vst [vmem:[#allocation17_spill] sm:$0xff] %v2872_v31  ;;  %833 = vrot.lane.b32.xlu0 %v2872_v31, %s2325_s30  ;;  %4008 = vst [vmem:[#allocation19_spill] sm:$0xff] %v2886_v36 }
 0x4f3   :  { %v780_v21 = vpop.permute.xlu0 %779 }
 0x4f4   :  { %903 = vrot.lane.b32.xlu1 %v2849_v0, %s2326_s6  ;;  %v3000_v58 = vadd.f32 %v780_v21, %v755_v32  ;;  %v3024_v30 = vadd.f32 %v780_v21, %v756_v2 }
 0x4f6   :  { %841 = vrot.lane.b32.xlu0 %v2879_v11, %s2325_s30 }
 0x4f8   :  { %911 = vrot.lane.b32.xlu1 %v2854_v44, %s2326_s6 }
 0x4fa   :  { %849 = vrot.lane.b32.xlu0 %v2886_v36, %s2325_s30 }
 0x4fc   :  { %919 = vrot.lane.b32.xlu1 %v2860_v28, %s2326_s6 }
 0x4fe   :  { %905 = vrot.lane.b32.xlu0 %v2863_v19, %s2326_s6 }
 0x4ff   :  { %v2978_v29 = vpop.permute.xlu1 %784 }
 0x500   :  { %927 = vrot.lane.b32.xlu1 %v2868_v35, %s2326_s6 }
 0x502   :  { %913 = vrot.lane.b32.xlu0 %v2872_v31, %s2326_s6 }
 0x503   :  { %v2990_v38 = vpop.permute.xlu0 %804 }
 0x504   :  { %983 = vrot.lane.b32.xlu1 %v2849_v0, %s2327_s7 }
 0x506   :  { %921 = vrot.lane.b32.xlu0 %v2879_v11, %s2326_s6 }
 0x508   :  { %991 = vrot.lane.b32.xlu1 %v2854_v44, %s2327_s7 }
 0x50a   :  { %929 = vrot.lane.b32.xlu0 %v2886_v36, %s2326_s6 }
 0x50c   :  { %999 = vrot.lane.b32.xlu1 %v2860_v28, %s2327_s7 }
 0x50e   :  { %985 = vrot.lane.b32.xlu0 %v2863_v19, %s2327_s7 }
 0x510   :  { %1007 = vrot.lane.b32.xlu1 %v2868_v35, %s2327_s7 }
 0x512   :  { %993 = vrot.lane.b32.xlu0 %v2872_v31, %s2327_s7 }
 0x514   :  { %1063 = vrot.lane.b32.xlu1 %v2849_v0, %s2324_s29 }
 0x516   :  { %1001 = vrot.lane.b32.xlu0 %v2879_v11, %s2327_s7 }
 0x518   :  { %1071 = vrot.lane.b32.xlu1 %v2854_v44, %s2324_s29 }
 0x51a   :  { %1009 = vrot.lane.b32.xlu0 %v2886_v36, %s2327_s7 }
 0x51c   :  { %1079 = vrot.lane.b32.xlu1 %v2860_v28, %s2324_s29 }
 0x51e   :  { %1065 = vrot.lane.b32.xlu0 %v2863_v19, %s2324_s29 }
 0x520   :  { %1087 = vrot.lane.b32.xlu1 %v2868_v35, %s2324_s29 }
 0x522   :  { %1073 = vrot.lane.b32.xlu0 %v2872_v31, %s2324_s29 }
 0x524   :  { %1159 = vrot.lane.b32.xlu1 %v2849_v0, %s2328_s8 }
 0x526   :  { %1081 = vrot.lane.b32.xlu0 %v2879_v11, %s2324_s29 }
 0x528   :  { %1167 = vrot.lane.b32.xlu1 %v2854_v44, %s2328_s8 }
 0x52a   :  { %1089 = vrot.lane.b32.xlu0 %v2886_v36, %s2324_s29 }
 0x52c   :  { %1175 = vrot.lane.b32.xlu1 %v2860_v28, %s2328_s8 }
 0x52e   :  { %1161 = vrot.lane.b32.xlu0 %v2863_v19, %s2328_s8 }
 0x530   :  { %1183 = vrot.lane.b32.xlu1 %v2868_v35, %s2328_s8 }
 0x532   :  { %1169 = vrot.lane.b32.xlu0 %v2872_v31, %s2328_s8 }
 0x534   :  { %1239 = vrot.lane.b32.xlu1 %v2849_v0, %s2329_s9 }
 0x536   :  { %1177 = vrot.lane.b32.xlu0 %v2879_v11, %s2328_s8 }
 0x538   :  { %1247 = vrot.lane.b32.xlu1 %v2854_v44, %s2329_s9 }
 0x53a   :  { %1185 = vrot.lane.b32.xlu0 %v2886_v36, %s2328_s8 }
 0x53c   :  { %1255 = vrot.lane.b32.xlu1 %v2860_v28, %s2329_s9 }
 0x53e   :  { %1241 = vrot.lane.b32.xlu0 %v2863_v19, %s2329_s9 }
 0x540   :  { %1263 = vrot.lane.b32.xlu1 %v2868_v35, %s2329_s9 }
 0x542   :  { %1249 = vrot.lane.b32.xlu0 %v2872_v31, %s2329_s9 }
 0x544   :  { %1319 = vrot.lane.b32.xlu1 %v2849_v0, %s2330_s10 }
 0x546   :  { %1257 = vrot.lane.b32.xlu0 %v2879_v11, %s2329_s9 }
 0x548   :  { %1327 = vrot.lane.b32.xlu1 %v2854_v44, %s2330_s10 }
 0x54a   :  { %1265 = vrot.lane.b32.xlu0 %v2886_v36, %s2329_s9 }
 0x54c   :  { %1335 = vrot.lane.b32.xlu1 %v2860_v28, %s2330_s10 }
 0x54e   :  { %1321 = vrot.lane.b32.xlu0 %v2863_v19, %s2330_s10 }
 0x550   :  { %1343 = vrot.lane.b32.xlu1 %v2868_v35, %s2330_s10 }
 0x552   :  { %1329 = vrot.lane.b32.xlu0 %v2872_v31, %s2330_s10 }
 0x554   :  { %1399 = vrot.lane.b32.xlu1 %v2849_v0, %s2332_s11 }
 0x556   :  { %1337 = vrot.lane.b32.xlu0 %v2879_v11, %s2330_s10  ;;  %v824_v33 = vpop.permute.xlu1 %823 }
 0x558   :  { %1407 = vrot.lane.b32.xlu1 %v2854_v44, %s2332_s11 }
 0x55a   :  { %1345 = vrot.lane.b32.xlu0 %v2886_v36, %s2330_s10  ;;  %v832_v37 = vpop.permute.xlu1 %831 }
 0x55c   :  { %1415 = vrot.lane.b32.xlu1 %v2860_v28, %s2332_s11 }
 0x55e   :  { %1401 = vrot.lane.b32.xlu0 %v2863_v19, %s2332_s11  ;;  %v840_v27 = vpop.permute.xlu1 %839 }
 0x55f   :  { %v863_v4 = vsel %vm112_vm0, %v840_v27, %v824_v33  ;;  %v855_v23 = vsel %vm112_vm0, %v824_v33, %v840_v27  ;;  %v3047_v33 = vadd.f32 %v2978_v29, %v757_v48  ;;  %v758_v48 = vmul.f32 %v2846_v60, %v2737_v63 }
 0x560   :  { %1423 = vrot.lane.b32.xlu1 %v2868_v35, %s2332_s11  ;;  %v826_v39 = vpop.permute.xlu0 %825  ;;  %v871_v22 = vmul.f32 %v863_v4, %v2514_v7  ;;  %v872_v59 = vmul.f32 %v855_v23, %v2507_v5  ;;  %v3066_v4 = vadd.f32 %v2990_v38, %v765_v26 }
 0x562   :  { %1409 = vrot.lane.b32.xlu0 %v2872_v31, %s2332_s11  ;;  %v848_v52 = vpop.permute.xlu1 %847 }
 0x563   :  { %v867_v54 = vsel %vm112_vm0, %v848_v52, %v832_v37  ;;  %v859_v10 = vsel %vm112_vm0, %v832_v37, %v848_v52 }
 0x564   :  { %827 = vrot.lane.b32.xlu1 %v3000_v58, %s2325_s30  ;;  %v834_v24 = vpop.permute.xlu0 %833  ;;  %v879_v56 = vmul.f32 %v867_v54, %v2514_v7  ;;  %v880_v20 = vmul.f32 %v859_v10, %v2507_v5 }
 0x566   :  { %1417 = vrot.lane.b32.xlu0 %v2879_v11, %s2332_s11  ;;  %v3014_v57 = vpop.permute.xlu1 %903 }
 0x568   :  { %v842_v1 = vpop.permute.xlu0 %841  ;;  %835 = vrot.lane.b32.xlu1 %v3008_v53, %s2325_s30 }
 0x569   :  { %v856_v34 = vsel %vm112_vm0, %v826_v39, %v842_v1  ;;  %v864_v15 = vsel %vm112_vm0, %v842_v1, %v826_v39  ;;  %v3051_v39 = vadd.f32 %v800_v14, %v764_v55 }
 0x56a   :  { %v873_v62 = vmul.f32 %v864_v15, %v2514_v7  ;;  %v874_v50 = vmul.f32 %v856_v34, %v2507_v5  ;;  %1425 = vrot.lane.b32.xlu0 %v2886_v36, %s2332_s11  ;;  %v3038_v9 = vpop.permute.xlu1 %911  ;;  %v766_v15 = vmul.f32 %v2844_v45, %v2747_v18 }
 0x56c   :  { %v2106_v21 = vpack.c.bf16 %v873_v62, %v871_v22  ;;  %v850_v27 = vpop.permute.xlu0 %849  ;;  %843 = vrot.lane.b32.xlu1 %v3024_v30, %s2325_s30  ;;  %v2104_v32 = vpack.c.bf16 %v874_v50, %v872_v59  ;;  %v3079_v22 = vadd.f32 %v2978_v29, %v758_v48  ;;  %v3092_v60 = vadd.f32 %v2990_v38, %v766_v15 }
 0x56d   :  { %v860_v25 = vsel %vm112_vm0, %v834_v24, %v850_v27  ;;  %v868_v3 = vsel %vm112_vm0, %v850_v27, %v834_v24 }
 0x56e   :  { %v881_v37 = vmul.f32 %v868_v3, %v2514_v7  ;;  %v882_v52 = vmul.f32 %v860_v25, %v2507_v5  ;;  %829 = vrot.lane.b32.xlu0 %v3047_v33, %s2325_s30  ;;  %2105 = vmatprep.subr.bf16.mxu0 %v2104_v32  ;;  %v3063_v14 = vpop.permute.xlu1 %919 }
 0x56f   :  { %2107 = vmatpush1.bf16.msra.mxu0 %v2106_v21 }
 0x570   :  { %v2178_v2 = vpack.c.bf16 %v881_v37, %v879_v56  ;;  %v3068_v23 = vpop.permute.xlu0 %905  ;;  %851 = vrot.lane.b32.xlu1 %v3051_v39, %s2325_s30  ;;  %v2176_v24 = vpack.c.bf16 %v882_v52, %v880_v20 }
 0x572   :  { %837 = vrot.lane.b32.xlu0 %v3066_v4, %s2325_s30  ;;  %2177 = vmatprep.subr.bf16.mxu1 %v2176_v24  ;;  %v3076_v1 = vpop.permute.xlu1 %927 }
 0x573   :  { %2179 = vmatpush1.bf16.msra.mxu1 %v2178_v2 }
 0x574   :  { %v3081_v34 = vpop.permute.xlu0 %913  ;;  %907 = vrot.lane.b32.xlu1 %v3000_v58, %s2326_s6 }
 0x576   :  { %845 = vrot.lane.b32.xlu0 %v3079_v22, %s2325_s30  ;;  %v3089_v63 = vpop.permute.xlu1 %983 }
 0x578   :  { %v3094_v59 = vpop.permute.xlu0 %921  ;;  %915 = vrot.lane.b32.xlu1 %v3008_v53, %s2326_s6 }
 0x57a   :  { %853 = vrot.lane.b32.xlu0 %v3092_v60, %s2325_s30  ;;  %v3100_v29 = vpop.permute.xlu1 %991 }
 0x57c   :  { %v3102_v54 = vpop.permute.xlu0 %929  ;;  %923 = vrot.lane.b32.xlu1 %v3024_v30, %s2326_s6 }
 0x57e   :  { %909 = vrot.lane.b32.xlu0 %v3047_v33, %s2326_s6  ;;  %v3108_v18 = vpop.permute.xlu1 %999 }
 0x580   :  { %v3110_v45 = vpop.permute.xlu0 %985  ;;  %931 = vrot.lane.b32.xlu1 %v3051_v39, %s2326_s6 }
 0x582   :  { %917 = vrot.lane.b32.xlu0 %v3066_v4, %s2326_s6  ;;  %v3116_v38 = vpop.permute.xlu1 %1007 }
 0x584   :  { %v3118_v62 = vpop.permute.xlu0 %993  ;;  %987 = vrot.lane.b32.xlu1 %v3000_v58, %s2327_s7 }
 0x586   :  { %925 = vrot.lane.b32.xlu0 %v3079_v22, %s2326_s6  ;;  %v3124_v50 = vpop.permute.xlu1 %1063 }
 0x588   :  { %v3126_v55 = vpop.permute.xlu0 %1001  ;;  %995 = vrot.lane.b32.xlu1 %v3008_v53, %s2327_s7 }
 0x58a   :  { %933 = vrot.lane.b32.xlu0 %v3092_v60, %s2326_s6  ;;  %v3132_v10 = vpop.permute.xlu1 %1071 }
 0x58c   :  { %v3134_v26 = vpop.permute.xlu0 %1009  ;;  %1003 = vrot.lane.b32.xlu1 %v3024_v30, %s2327_s7 }
 0x58e   :  { %989 = vrot.lane.b32.xlu0 %v3047_v33, %s2327_s7  ;;  %v3140_v21 = vpop.permute.xlu1 %1079 }
 0x590   :  { %v3142_v27 = vpop.permute.xlu0 %1065  ;;  %1011 = vrot.lane.b32.xlu1 %v3051_v39, %s2327_s7 }
 0x592   :  { %997 = vrot.lane.b32.xlu0 %v3066_v4, %s2327_s7  ;;  %v3148_v32 = vpop.permute.xlu1 %1087 }
 0x594   :  { %v3150_v56 = vpop.permute.xlu0 %1073  ;;  %1067 = vrot.lane.b32.xlu1 %v3000_v58, %s2324_s29 }
 0x596   :  { %1005 = vrot.lane.b32.xlu0 %v3079_v22, %s2327_s7  ;;  %v1160_v25 = vpop.permute.xlu1 %1159 }
 0x598   :  { %v3156_v3 = vpop.permute.xlu0 %1081  ;;  %1075 = vrot.lane.b32.xlu1 %v3008_v53, %s2324_s29 }
 0x59a   :  { %1013 = vrot.lane.b32.xlu0 %v3092_v60, %s2327_s7  ;;  %v1168_v20 = vpop.permute.xlu1 %1167 }
 0x59c   :  { %v3162_v37 = vpop.permute.xlu0 %1089  ;;  %1083 = vrot.lane.b32.xlu1 %v3024_v30, %s2324_s29 }
 0x59e   :  { %1069 = vrot.lane.b32.xlu0 %v3047_v33, %s2324_s29  ;;  %v1176_v52 = vpop.permute.xlu1 %1175 }
 0x59f   :  { %v1191_v36 = vsel %vm212_vm4, %v1160_v25, %v1176_v52  ;;  %v1199_v35 = vsel %vm212_vm4, %v1176_v52, %v1160_v25 }
 0x5a0   :  { %v1162_v2 = vpop.permute.xlu0 %1161  ;;  %1091 = vrot.lane.b32.xlu1 %v3051_v39, %s2324_s29  ;;  %v3191_v0 = vmul.f32 %v1191_v36, %v2582_v12  ;;  %v3194_v11 = vmul.f32 %v1199_v35, %v2585_v13 }
 0x5a2   :  { %1077 = vrot.lane.b32.xlu0 %v3066_v4, %s2324_s29  ;;  %v1184_v24 = vpop.permute.xlu1 %1183  ;;  %4009 = vst [vmem:[#allocation20_spill] sm:$0xff] %v3191_v0 }
 0x5a3   :  { %v1195_v48 = vsel %vm212_vm4, %v1168_v20, %v1184_v24  ;;  %v1203_v15 = vsel %vm212_vm4, %v1184_v24, %v1168_v20 }
 0x5a4   :  { %v1170_v31 = vpop.permute.xlu0 %1169  ;;  %1163 = vrot.lane.b32.xlu1 %v3000_v58, %s2328_s8 }
 0x5a6   :  { %1085 = vrot.lane.b32.xlu0 %v3079_v22, %s2324_s29  ;;  %v1240_v44 = vpop.permute.xlu1 %1239 }
 0x5a8   :  { %v1178_v19 = vpop.permute.xlu0 %1177  ;;  %1171 = vrot.lane.b32.xlu1 %v3008_v53, %s2328_s8 }
 0x5a9   :  { %v1192_v20 = vsel %vm212_vm4, %v1162_v2, %v1178_v19  ;;  %v1200_v24 = vsel %vm212_vm4, %v1178_v19, %v1162_v2 }
 0x5aa   :  { %v3197_v28 = vmul.f32 %v1192_v20, %v2582_v12  ;;  %v3200_v25 = vmul.f32 %v1200_v24, %v2585_v13  ;;  %1093 = vrot.lane.b32.xlu0 %v3092_v60, %s2324_s29  ;;  %v1248_v52 = vpop.permute.xlu1 %1247  ;;  %v3215_v20 = vmul.f32 %v1195_v48, %v2582_v12  ;;  %v3218_v24 = vmul.f32 %v1203_v15, %v2585_v13 }
 0x5ac   :  { %4010 = vst [vmem:[#allocation21_spill] sm:$0xff] %v3197_v28  ;;  %v1186_v19 = vpop.permute.xlu0 %1185  ;;  %1179 = vrot.lane.b32.xlu1 %v3024_v30, %s2328_s8  ;;  %4011 = vst [vmem:[#allocation22_spill] sm:$0xff] %v3215_v20 }
 0x5ad   :  { %v1196_v36 = vsel %vm212_vm4, %v1170_v31, %v1186_v19  ;;  %v1204_v2 = vsel %vm212_vm4, %v1186_v19, %v1170_v31  ;;  %4012 = vst [vmem:[#allocation23_spill] sm:$0xff] %v3218_v24 }
 0x5ae   :  { %v3221_v42 = vmul.f32 %v1196_v36, %v2582_v12  ;;  %v3224_v0 = vmul.f32 %v1204_v2, %v2585_v13  ;;  %1165 = vrot.lane.b32.xlu0 %v3047_v33, %s2328_s8  ;;  %v1256_v35 = vpop.permute.xlu1 %1255 }
 0x5af   :  { %v1271_v28 = vsel %vm237_vm5, %v1240_v44, %v1256_v35  ;;  %v1279_v31 = vsel %vm237_vm5, %v1256_v35, %v1240_v44 }
 0x5b0   :  { %4013 = vst [vmem:[#allocation24_spill] sm:$0xff] %v3221_v42  ;;  %4014 = vst [vmem:[#allocation25_spill] sm:$0xff] %v3224_v0  ;;  %v1242_v15 = vpop.permute.xlu0 %1241  ;;  %1187 = vrot.lane.b32.xlu1 %v3051_v39, %s2328_s8 }
 0x5b2   :  { %1173 = vrot.lane.b32.xlu0 %v3066_v4, %s2328_s8  ;;  %v1264_v36 = vpop.permute.xlu1 %1263 }
 0x5b3   :  { %v1275_v2 = vsel %vm237_vm5, %v1248_v52, %v1264_v36  ;;  %v1283_v44 = vsel %vm237_vm5, %v1264_v36, %v1248_v52  ;;  %v3255_v52 = vmul.f32 %v1271_v28, %v2611_v46  ;;  %v3258_v36 = vmul.f32 %v1279_v31, %v2614_v47 }
 0x5b4   :  { %v1250_v35 = vpop.permute.xlu0 %1249  ;;  %1243 = vrot.lane.b32.xlu1 %v3000_v58, %s2329_s9 }
 0x5b5   :  { %4015 = vst [vmem:[#allocation26_spill] sm:$0xff] %v3255_v52  ;;  %4016 = vst [vmem:[#allocation27_spill] sm:$0xff] %v3258_v36 }
 0x5b6   :  { %1181 = vrot.lane.b32.xlu0 %v3079_v22, %s2328_s8  ;;  %v1320_v48 = vpop.permute.xlu1 %1319 }
 0x5b8   :  { %v1258_v20 = vpop.permute.xlu0 %1257  ;;  %1251 = vrot.lane.b32.xlu1 %v3008_v53, %s2329_s9 }
 0x5b9   :  { %v1272_v19 = vsel %vm237_vm5, %v1242_v15, %v1258_v20  ;;  %v1280_v42 = vsel %vm237_vm5, %v1258_v20, %v1242_v15  ;;  %v3279_v15 = vmul.f32 %v1275_v2, %v2611_v46 }
 0x5ba   :  { %v3261_v24 = vmul.f32 %v1272_v19, %v2611_v46  ;;  %v3264_v0 = vmul.f32 %v1280_v42, %v2614_v47  ;;  %1189 = vrot.lane.b32.xlu0 %v3092_v60, %s2328_s8  ;;  %v1328_v13 = vpop.permute.xlu1 %1327  ;;  %v3282_v19 = vmul.f32 %v1283_v44, %v2614_v47 }
 0x5bb   :  { %4019 = vst [vmem:[#allocation30_spill] sm:$0xff] %v3279_v15 }
 0x5bc   :  { %4017 = vst [vmem:[#allocation28_spill] sm:$0xff] %v3261_v24  ;;  %4018 = vst [vmem:[#allocation29_spill] sm:$0xff] %v3264_v0  ;;  %v1266_v20 = vpop.permute.xlu0 %1265  ;;  %1259 = vrot.lane.b32.xlu1 %v3024_v30, %s2329_s9 }
 0x5bd   :  { %v1276_v31 = vsel %vm237_vm5, %v1250_v35, %v1266_v20  ;;  %v1284_v42 = vsel %vm237_vm5, %v1266_v20, %v1250_v35  ;;  %4020 = vst [vmem:[#allocation31_spill] sm:$0xff] %v3282_v19 }
 0x5be   :  { %v3285_v12 = vmul.f32 %v1276_v31, %v2611_v46  ;;  %v3288_v52 = vmul.f32 %v1284_v42, %v2614_v47  ;;  %1245 = vrot.lane.b32.xlu0 %v3047_v33, %s2329_s9  ;;  %v1336_v28 = vpop.permute.xlu1 %1335 }
 0x5bf   :  { %v1351_v24 = vsel %vm262_vm6, %v1320_v48, %v1336_v28  ;;  %v1359_v2 = vsel %vm262_vm6, %v1336_v28, %v1320_v48 }
 0x5c0   :  { %4021 = vst [vmem:[#allocation32_spill] sm:$0xff] %v3285_v12  ;;  %4022 = vst [vmem:[#allocation33_spill] sm:$0xff] %v3288_v52  ;;  %v1322_v35 = vpop.permute.xlu0 %1321  ;;  %1267 = vrot.lane.b32.xlu1 %v3051_v39, %s2329_s9 }
 0x5c2   :  { %1253 = vrot.lane.b32.xlu0 %v3066_v4, %s2329_s9  ;;  %v1344_v31 = vpop.permute.xlu1 %1343 }
 0x5c3   :  { %v1355_v42 = vsel %vm262_vm6, %v1328_v13, %v1344_v31  ;;  %v1363_v48 = vsel %vm262_vm6, %v1344_v31, %v1328_v13  ;;  %v3319_v13 = vmul.f32 %v1351_v24, %v2618_v49  ;;  %v3322_v31 = vmul.f32 %v1359_v2, %v2621_v51 }
 0x5c4   :  { %v1330_v28 = vpop.permute.xlu0 %1329  ;;  %1323 = vrot.lane.b32.xlu1 %v3000_v58, %s2330_s10 }
 0x5c5   :  { %4023 = vst [vmem:[#allocation34_spill] sm:$0xff] %v3319_v13  ;;  %4024 = vst [vmem:[#allocation35_spill] sm:$0xff] %v3322_v31 }
 0x5c6   :  { %1261 = vrot.lane.b32.xlu0 %v3079_v22, %s2329_s9  ;;  %v1400_v44 = vpop.permute.xlu1 %1399 }
 0x5c8   :  { %v1338_v47 = vpop.permute.xlu0 %1337  ;;  %1331 = vrot.lane.b32.xlu1 %v3008_v53, %s2330_s10 }
 0x5c9   :  { %v1352_v20 = vsel %vm262_vm6, %v1322_v35, %v1338_v47  ;;  %v1360_v46 = vsel %vm262_vm6, %v1338_v47, %v1322_v35  ;;  %v3343_v35 = vmul.f32 %v1355_v42, %v2618_v49 }
 0x5ca   :  { %v3325_v15 = vmul.f32 %v1352_v20, %v2618_v49  ;;  %v3328_v12 = vmul.f32 %v1360_v46, %v2621_v51  ;;  %1269 = vrot.lane.b32.xlu0 %v3092_v60, %s2329_s9  ;;  %v1408_v19 = vpop.permute.xlu1 %1407  ;;  %v3346_v20 = vmul.f32 %v1363_v48, %v2621_v51 }
 0x5cb   :  { %4027 = vst [vmem:[#allocation38_spill] sm:$0xff] %v3343_v35 }
 0x5cc   :  { %4025 = vst [vmem:[#allocation36_spill] sm:$0xff] %v3325_v15  ;;  %4026 = vst [vmem:[#allocation37_spill] sm:$0xff] %v3328_v12  ;;  %v1346_v47 = vpop.permute.xlu0 %1345  ;;  %1339 = vrot.lane.b32.xlu1 %v3024_v30, %s2330_s10 }
 0x5cd   :  { %v1356_v2 = vsel %vm262_vm6, %v1330_v28, %v1346_v47  ;;  %v1364_v46 = vsel %vm262_vm6, %v1346_v47, %v1330_v28  ;;  %4028 = vst [vmem:[#allocation39_spill] sm:$0xff] %v3346_v20 }
 0x5ce   :  { %v3349_v52 = vmul.f32 %v1356_v2, %v2618_v49  ;;  %v3352_v13 = vmul.f32 %v1364_v46, %v2621_v51  ;;  %1325 = vrot.lane.b32.xlu0 %v3047_v33, %s2330_s10  ;;  %v1416_v24 = vpop.permute.xlu1 %1415  ;;  %v1624_v2 = vld [vmem:[%s3932_s4 + $0x8] sm:$0xff] }
 0x5cf   :  { %v1431_v15 = vsel %vm287_vm7, %v1400_v44, %v1416_v24  ;;  %v1439_v42 = vsel %vm287_vm7, %v1416_v24, %v1400_v44  ;;  %1728 = vmatprep.mubr.f32.mxu0 %v1624_v2  ;;  %1906 = vmatprep.mubr.f32.mxu1 %v1624_v2 }
 0x5d0   :  { %4029 = vst [vmem:[#allocation40_spill] sm:$0xff] %v3349_v52  ;;  %4030 = vst [vmem:[#allocation41_spill] sm:$0xff] %v3352_v13  ;;  %v1402_v28 = vpop.permute.xlu0 %1401  ;;  %1347 = vrot.lane.b32.xlu1 %v3051_v39, %s2330_s10  ;;  %v3389_v2 = vmul.f32 %v1439_v42, %v2646_v16 }
 0x5d2   :  { %1333 = vrot.lane.b32.xlu0 %v3066_v4, %s2330_s10  ;;  %v1424_v46 = vpop.permute.xlu1 %1423  ;;  %4032 = vst [vmem:[#allocation43_spill] sm:$0xff] %v3389_v2 }
 0x5d3   :  { %v1435_v44 = vsel %vm287_vm7, %v1408_v19, %v1424_v46  ;;  %v1443_v24 = vsel %vm287_vm7, %v1424_v46, %v1408_v19  ;;  %v3386_v19 = vmul.f32 %v1431_v15, %v2649_v17 }
 0x5d4   :  { %v1410_v48 = vpop.permute.xlu0 %1409  ;;  %1403 = vrot.lane.b32.xlu1 %v3000_v58, %s2332_s11  ;;  %v3410_v42 = vmul.f32 %v1435_v44, %v2649_v17 }
 0x5d5   :  { %4031 = vst [vmem:[#allocation42_spill] sm:$0xff] %v3386_v19 }
 0x5d6   :  { %1341 = vrot.lane.b32.xlu0 %v3079_v22, %s2330_s10  ;;  %v828_v47 = vpop.permute.xlu1 %827  ;;  %4035 = vst [vmem:[#allocation46_spill] sm:$0xff] %v3410_v42  ;;  %v944_v42 = vsel %vm137_vm1, %v3094_v59, %v3068_v23 }
 0x5d8   :  { %v1418_v51 = vpop.permute.xlu0 %1417  ;;  %1411 = vrot.lane.b32.xlu1 %v3008_v53, %s2332_s11 }
 0x5d9   :  { %v1432_v49 = vsel %vm287_vm7, %v1402_v28, %v1418_v51  ;;  %v1440_v35 = vsel %vm287_vm7, %v1418_v51, %v1402_v28  ;;  %v3413_v28 = vmul.f32 %v1443_v24, %v2646_v16 }
 0x5da   :  { %v3392_v46 = vmul.f32 %v1432_v49, %v2649_v17  ;;  %v3395_v52 = vmul.f32 %v1440_v35, %v2646_v16  ;;  %1349 = vrot.lane.b32.xlu0 %v3092_v60, %s2330_s10  ;;  %v836_v20 = vpop.permute.xlu1 %835 }
 0x5db   :  { %4036 = vst [vmem:[#allocation47_spill] sm:$0xff] %v3413_v28 }
 0x5dc   :  { %4033 = vst [vmem:[#allocation44_spill] sm:$0xff] %v3392_v46  ;;  %4034 = vst [vmem:[#allocation45_spill] sm:$0xff] %v3395_v52  ;;  %v1426_v51 = vpop.permute.xlu0 %1425  ;;  %1419 = vrot.lane.b32.xlu1 %v3024_v30, %s2332_s11  ;;  %v936_v46 = vsel %vm137_vm1, %v3068_v23, %v3094_v59 }
 0x5dd   :  { %v1436_v49 = vsel %vm287_vm7, %v1410_v48, %v1426_v51  ;;  %v1444_v35 = vsel %vm287_vm7, %v1426_v51, %v1410_v48 }
 0x5de   :  { %v3416_v13 = vmul.f32 %v1436_v49, %v2649_v17  ;;  %v3419_v19 = vmul.f32 %v1444_v35, %v2646_v16  ;;  %1405 = vrot.lane.b32.xlu0 %v3047_v33, %s2332_s11  ;;  %v844_v15 = vpop.permute.xlu1 %843  ;;  %v2318_v49 = vld [vmem:[%s3929_s2 + $0x50] sm:$0xff]  ;;  %v935_v35 = vsel %vm137_vm1, %v3014_v57, %v3063_v14 }
 0x5df   :  { %v865_v44 = vsel %vm112_vm0, %v844_v15, %v828_v47  ;;  %v952_v17 = vmul.f32 %v935_v35, %v2511_v6 }
 0x5e0   :  { %4037 = vst [vmem:[#allocation48_spill] sm:$0xff] %v3416_v13  ;;  %4038 = vst [vmem:[#allocation49_spill] sm:$0xff] %v3419_v19  ;;  %v830_v48 = vpop.permute.xlu0 %829  ;;  %1427 = vrot.lane.b32.xlu1 %v3051_v39, %s2332_s11  ;;  %v954_v13 = vmul.f32 %v936_v46, %v2511_v6  ;;  %v2319_v19 = vld [vmem:[%s3929_s2 + $0x60] sm:$0xff] }
 0x5e2   :  { %1413 = vrot.lane.b32.xlu0 %v3066_v4, %s2332_s11  ;;  %v852_v24 = vpop.permute.xlu1 %851  ;;  %v2112_v36 = vpack.c.bf16 %v954_v13, %v952_v17  ;;  %v2320_v17 = vld [vmem:[%s3929_s2 + $0x58] sm:$0xff] }
 0x5e3   :  { %v869_v46 = vsel %vm112_vm0, %v852_v24, %v836_v20 }
 0x5e4   :  { %v838_v51 = vpop.permute.xlu0 %837  ;;  %1636 = vperm.xlu1 %2297, %v2318_v49   ;;  %v857_v49 = vsel %vm112_vm0, %v828_v47, %v844_v15  ;;  %v940_v47 = vsel %vm137_vm1, %v3081_v34, %v3102_v54  ;;  %v875_v15 = vmul.f32 %v865_v44, %v2514_v7  ;;  %v943_v44 = vsel %vm137_vm1, %v3063_v14, %v3014_v57 }
 0x5e5   :  { %v876_v59 = vmul.f32 %v857_v49, %v2507_v5  ;;  %v861_v49 = vsel %vm112_vm0, %v836_v20, %v852_v24  ;;  %v962_v57 = vmul.f32 %v940_v47, %v2511_v6  ;;  %v883_v14 = vmul.f32 %v869_v46, %v2514_v7 }
 0x5e6   :  { %1421 = vrot.lane.b32.xlu0 %v3079_v22, %s2332_s11  ;;  %v3446_v16 = vpop.permute.xlu1 %907  ;;  %v884_v20 = vmul.f32 %v861_v49, %v2507_v5  ;;  %v951_v13 = vmul.f32 %v943_v44, %v2517_v8 }
 0x5e8   :  { %v846_v28 = vpop.permute.xlu0 %845  ;;  %1644 = vperm.xlu1 %2297, %v2319_v19  }
 0x5e9   :  { %v858_v35 = vsel %vm112_vm0, %v830_v48, %v846_v28  ;;  %v866_v23 = vsel %vm112_vm0, %v846_v28, %v830_v48  ;;  %v939_v28 = vsel %vm137_vm1, %v3038_v9, %v3076_v1  ;;  %v953_v48 = vmul.f32 %v944_v42, %v2517_v8 }
 0x5ea   :  { %v877_v19 = vmul.f32 %v866_v23, %v2514_v7  ;;  %v878_v2 = vmul.f32 %v858_v35, %v2507_v5  ;;  %1429 = vrot.lane.b32.xlu0 %v3092_v60, %s2332_s11  ;;  %v3475_v52 = vpop.permute.xlu1 %915  ;;  %v948_v35 = vsel %vm137_vm1, %v3102_v54, %v3081_v34 }
 0x5eb   :  { %v961_v47 = vmul.f32 %v948_v35, %v2517_v8 }
 0x5ec   :  { %v2110_v23 = vpack.c.bf16 %v877_v19, %v875_v15  ;;  %v854_v31 = vpop.permute.xlu0 %853  ;;  %v2108_v12 = vpack.c.bf16 %v878_v2, %v876_v59  ;;  %v960_v2 = vmul.f32 %v939_v28, %v2511_v6  ;;  %v1016_v19 = vsel %vm162_vm2, %v3110_v45, %v3126_v55 }
 0x5ed   :  { %v862_v0 = vsel %vm112_vm0, %v838_v51, %v854_v31  ;;  %v870_v42 = vsel %vm112_vm0, %v854_v31, %v838_v51  ;;  %v947_v31 = vsel %vm137_vm1, %v3076_v1, %v3038_v9  ;;  %v1034_v35 = vmul.f32 %v1016_v19, %v2550_v41 }
 0x5ee   :  { %v885_v24 = vmul.f32 %v870_v42, %v2514_v7  ;;  %v886_v34 = vmul.f32 %v862_v0, %v2507_v5  ;;  %1640 = vperm.xlu0 %2296, %v2320_v17   ;;  %2109 = vmatprep.subr.bf16.mxu0 %v2108_v12  ;;  %v924_v54 = vpop.permute.xlu1 %923  ;;  %v2114_v0 = vpack.c.bf16 %v953_v48, %v951_v13  ;;  %v2321_v12 = vld [vmem:[%s3929_s2 + $0x68] sm:$0xff] }
 0x5ef   :  { %2111 = vmatpush1.bf16.msra.mxu0 %v2110_v23  ;;  %v2184_v59 = vpack.c.bf16 %v962_v57, %v960_v2  ;;  %v959_v46 = vmul.f32 %v947_v31, %v2517_v8  ;;  %v937_v28 = vsel %vm137_vm1, %v3446_v16, %v924_v54  ;;  %v945_v48 = vsel %vm137_vm1, %v924_v54, %v3446_v16 }
 0x5f0   :  { %v2182_v7 = vpack.c.bf16 %v885_v24, %v883_v14  ;;  %v910_v51 = vpop.permute.xlu0 %909  ;;  %2113 = vmatprep.subr.bf16.mxu0 %v2112_v36  ;;  %v2180_v5 = vpack.c.bf16 %v886_v34, %v884_v20  ;;  %v1015_v36 = vsel %vm162_vm2, %v3089_v63, %v3108_v18  ;;  %v1024_v57 = vsel %vm162_vm2, %v3126_v55, %v3110_v45 }
 0x5f1   :  { %v2186_v1 = vpack.c.bf16 %v961_v47, %v959_v46  ;;  %v1032_v49 = vmul.f32 %v1015_v36, %v2550_v41  ;;  %v1020_v14 = vsel %vm162_vm2, %v3118_v62, %v3134_v26  ;;  %v955_v20 = vmul.f32 %v945_v48, %v2517_v8 }
 0x5f2   :  { %1648 = vperm.xlu0 %2296, %v2321_v12   ;;  %2181 = vmatprep.subr.bf16.mxu1 %v2180_v5  ;;  %v932_v15 = vpop.permute.xlu1 %931  ;;  %v956_v24 = vmul.f32 %v937_v28, %v2511_v6  ;;  %v1023_v55 = vsel %vm162_vm2, %v3108_v18, %v3089_v63  ;;  %v1019_v54 = vsel %vm162_vm2, %v3100_v29, %v3116_v38 }
 0x5f3   :  { %2115 = vmatpush1.bf16.msra.mxu0 %v2114_v0  ;;  %2183 = vmatpush1.bf16.msra.mxu1 %v2182_v7  ;;  %v941_v13 = vsel %vm137_vm1, %v3475_v52, %v932_v15  ;;  %v949_v31 = vsel %vm137_vm1, %v932_v15, %v3475_v52  ;;  %v1033_v2 = vmul.f32 %v1024_v57, %v2547_v40 }
 0x5f4   :  { %v918_v9 = vpop.permute.xlu0 %917  ;;  %2185 = vmatprep.subr.bf16.mxu1 %v2184_v59  ;;  %v2120_v0 = vpack.c.bf16 %v1034_v35, %v1032_v49  ;;  %v1028_v63 = vsel %vm162_vm2, %v3134_v26, %v3118_v62  ;;  %v1042_v18 = vmul.f32 %v1020_v14, %v2550_v41  ;;  %v963_v52 = vmul.f32 %v949_v31, %v2517_v8 }
 0x5f5   :  { %v964_v15 = vmul.f32 %v941_v13, %v2511_v6  ;;  %v1031_v62 = vmul.f32 %v1023_v55, %v2547_v40  ;;  %v1027_v26 = vsel %vm162_vm2, %v3116_v38, %v3100_v29  ;;  %v1095_v29 = vsel %vm187_vm3, %v3124_v50, %v3140_v21 }
 0x5f6   :  { %v988_v44 = vpop.permute.xlu1 %987  ;;  %v1039_v35 = vmul.f32 %v1027_v26, %v2547_v40  ;;  %v1096_v38 = vsel %vm187_vm3, %v3142_v27, %v3156_v3  ;;  %v1100_v55 = vsel %vm187_vm3, %v3150_v56, %v3162_v37 }
 0x5f7   :  { %2187 = vmatpush1.bf16.msra.mxu1 %v2186_v1  ;;  %v2122_v48 = vpack.c.bf16 %v1033_v2, %v1031_v62 }
 0x5f8   :  { %v926_v23 = vpop.permute.xlu0 %925 }
 0x5f9   :  { %v938_v42 = vsel %vm137_vm1, %v910_v51, %v926_v23  ;;  %v946_v16 = vsel %vm137_vm1, %v926_v23, %v910_v51 }
 0x5fa   :  { %v957_v34 = vmul.f32 %v946_v16, %v2517_v8  ;;  %v958_v17 = vmul.f32 %v938_v42, %v2511_v6  ;;  %v996_v45 = vpop.permute.xlu1 %995 }
 0x5fc   :  { %v2118_v7 = vpack.c.bf16 %v957_v34, %v955_v20  ;;  %v934_v51 = vpop.permute.xlu0 %933  ;;  %v2116_v5 = vpack.c.bf16 %v958_v17, %v956_v24  ;;  %v1112_v20 = vmul.f32 %v1095_v29, %v2557_v43  ;;  %v1114_v24 = vmul.f32 %v1096_v38, %v2557_v43 }
 0x5fd   :  { %v942_v47 = vsel %vm137_vm1, %v918_v9, %v934_v51  ;;  %v950_v12 = vsel %vm137_vm1, %v934_v51, %v918_v9  ;;  %v1040_v9 = vmul.f32 %v1019_v54, %v2550_v41  ;;  %v1104_v17 = vsel %vm187_vm3, %v3156_v3, %v3142_v27 }
 0x5fe   :  { %v965_v59 = vmul.f32 %v950_v12, %v2517_v8  ;;  %v966_v46 = vmul.f32 %v942_v47, %v2511_v6  ;;  %2117 = vmatprep.subr.bf16.mxu0 %v2116_v5  ;;  %v1004_v1 = vpop.permute.xlu1 %1003  ;;  %v1041_v8 = vmul.f32 %v1028_v63, %v2547_v40  ;;  %v1103_v3 = vsel %vm187_vm3, %v3140_v21, %v3124_v50  ;;  %v4039_v63 = vld [vmem:[#allocation3_spill] sm:$0xff] }
 0x5ff   :  { %2119 = vmatpush1.bf16.msra.mxu0 %v2118_v7  ;;  %v2192_v49 = vpack.c.bf16 %v1042_v18, %v1040_v9  ;;  %v1017_v42 = vsel %vm162_vm2, %v988_v44, %v1004_v1  ;;  %v1025_v16 = vsel %vm162_vm2, %v1004_v1, %v988_v44  ;;  %v1099_v51 = vsel %vm187_vm3, %v3132_v10, %v3148_v32 }
 0x600   :  { %v2190_v36 = vpack.c.bf16 %v965_v59, %v963_v52  ;;  %v990_v19 = vpop.permute.xlu0 %989  ;;  %2121 = vmatprep.subr.bf16.mxu0 %v2120_v0  ;;  %v2188_v28 = vpack.c.bf16 %v966_v46, %v964_v15  ;;  %v2194_v57 = vpack.c.bf16 %v1041_v8, %v1039_v35  ;;  %v1035_v13 = vmul.f32 %v1025_v16, %v2547_v40 }
 0x601   :  { %v1036_v31 = vmul.f32 %v1017_v42, %v2550_v41  ;;  %v1113_v18 = vmul.f32 %v1104_v17, %v4039_v63  ;;  %v2128_v15 = vpack.c.bf16 %v1114_v24, %v1112_v20  ;;  %v1108_v50 = vsel %vm187_vm3, %v3162_v37, %v3150_v56 }
 0x602   :  { %2189 = vmatprep.subr.bf16.mxu1 %v2188_v28  ;;  %v1012_v6 = vpop.permute.xlu1 %1011  ;;  %v1122_v21 = vmul.f32 %v1100_v55, %v2557_v43  ;;  %v1111_v56 = vmul.f32 %v1103_v3, %v4039_v63  ;;  %v1107_v37 = vsel %vm187_vm3, %v3148_v32, %v3132_v10  ;;  %v4041_v3 = vld [vmem:[#allocation18_spill] sm:$0xff] }
 0x603   :  { %2123 = vmatpush1.bf16.msra.mxu0 %v2122_v48  ;;  %2191 = vmatpush1.bf16.msra.mxu1 %v2190_v36  ;;  %v1021_v5 = vsel %vm162_vm2, %v996_v45, %v1012_v6  ;;  %v1029_v0 = vsel %vm162_vm2, %v1012_v6, %v996_v45  ;;  %v1120_v36 = vmul.f32 %v1099_v51, %v2557_v43 }
 0x604   :  { %v998_v23 = vpop.permute.xlu0 %997  ;;  %2193 = vmatprep.subr.bf16.mxu1 %v2192_v49  ;;  %v1043_v45 = vmul.f32 %v1029_v0, %v2547_v40  ;;  %v1044_v1 = vmul.f32 %v1021_v5, %v2550_v41  ;;  %v2130_v8 = vpack.c.bf16 %v1113_v18, %v1111_v56  ;;  %v1119_v49 = vmul.f32 %v1107_v37, %v4039_v63  ;;  %v4047_v56 = vld [vmem:[#allocation17_spill] sm:$0xff] }
 0x605   :  { %v2200_v6 = vpack.c.bf16 %v1122_v21, %v1120_v36  ;;  %v4043_v21 = vld [vmem:[#allocation15_spill] sm:$0xff] }
 0x606   :  { %v1068_v14 = vpop.permute.xlu1 %1067 }
 0x607   :  { %2195 = vmatpush1.bf16.msra.mxu1 %v2194_v57 }
 0x608   :  { %v1006_v34 = vpop.permute.xlu0 %1005 }
 0x609   :  { %v1018_v54 = vsel %vm162_vm2, %v990_v19, %v1006_v34  ;;  %v1026_v44 = vsel %vm162_vm2, %v1006_v34, %v990_v19 }
 0x60a   :  { %v1037_v2 = vmul.f32 %v1026_v44, %v2547_v40  ;;  %v1038_v7 = vmul.f32 %v1018_v54, %v2550_v41  ;;  %v1076_v27 = vpop.permute.xlu1 %1075 }
 0x60c   :  { %v2126_v47 = vpack.c.bf16 %v1037_v2, %v1035_v13  ;;  %v1014_v12 = vpop.permute.xlu0 %1013  ;;  %v2124_v52 = vpack.c.bf16 %v1038_v7, %v1036_v31  ;;  %v4040_v7 = vld [vmem:[#allocation14_spill] sm:$0xff] }
 0x60d   :  { %v1022_v59 = vsel %vm162_vm2, %v998_v23, %v1014_v12  ;;  %v1030_v46 = vsel %vm162_vm2, %v1014_v12, %v998_v23  ;;  %v2136_v51 = vpack.c.bf16 %v4041_v3, %v4040_v7  ;;  %v4060_v7 = vld [vmem:[#allocation29_spill] sm:$0xff]  ;;  %v4061_v3 = vld [vmem:[#allocation27_spill] sm:$0xff] }
 0x60e   :  { %v1045_v62 = vmul.f32 %v1030_v46, %v2547_v40  ;;  %v1046_v26 = vmul.f32 %v1022_v59, %v2550_v41  ;;  %2125 = vmatprep.subr.bf16.mxu0 %v2124_v52  ;;  %v1084_v9 = vpop.permute.xlu1 %1083  ;;  %v1121_v40 = vmul.f32 %v1108_v50, %v4039_v63  ;;  %v4042_v50 = vld [vmem:[#allocation12_spill] sm:$0xff] }
 0x60f   :  { %2127 = vmatpush1.bf16.msra.mxu0 %v2126_v47  ;;  %v1097_v32 = vsel %vm187_vm3, %v1068_v14, %v1084_v9  ;;  %v1105_v57 = vsel %vm187_vm3, %v1084_v9, %v1068_v14  ;;  %v2138_v59 = vpack.c.bf16 %v4043_v21, %v4042_v50  ;;  %v4046_v9 = vld [vmem:[#allocation13_spill] sm:$0xff] }
 0x610   :  { %v2198_v19 = vpack.c.bf16 %v1045_v62, %v1043_v45  ;;  %v1070_v28 = vpop.permute.xlu0 %1069  ;;  %2129 = vmatprep.subr.bf16.mxu0 %v2128_v15  ;;  %v2196_v48 = vpack.c.bf16 %v1046_v26, %v1044_v1  ;;  %v2202_v23 = vpack.c.bf16 %v1121_v40, %v1119_v49  ;;  %v1115_v16 = vmul.f32 %v1105_v57, %v4039_v63  ;;  %v4044_v1 = vld [vmem:[#allocation16_spill] sm:$0xff]  ;;  %v4045_v62 = vld [vmem:[#allocation19_spill] sm:$0xff]  ;;  %v4050_v40 = vld [vmem:[#allocation5_spill] sm:$0xff] }
 0x611   :  { %v1116_v20 = vmul.f32 %v1097_v32, %v2557_v43  ;;  %v2140_v45 = vpack.c.bf16 %v3079_v22, %v3024_v30  ;;  %v2142_v26 = vpack.c.bf16 %v3047_v33, %v3000_v58  ;;  %v2210_v37 = vpack.c.bf16 %v4047_v56, %v4046_v9  ;;  %v4054_v57 = vld [vmem:[#allocation25_spill] sm:$0xff]  ;;  %v4072_v9 = vld [vmem:[#allocation6_spill] sm:$0xff] }
 0x612   :  { %2197 = vmatprep.subr.bf16.mxu1 %v2196_v48  ;;  %v1092_v41 = vpop.permute.xlu1 %1091  ;;  %v4048_v48 = vpack.c.bf16 %v3200_v25, %v3194_v11 }
 0x613   :  { %2131 = vmatpush1.bf16.msra.mxu0 %v2130_v8  ;;  %2199 = vmatpush1.bf16.msra.mxu1 %v2198_v19  ;;  %v1101_v14 = vsel %vm187_vm3, %v1076_v27, %v1092_v41  ;;  %v1109_v55 = vsel %vm187_vm3, %v1092_v41, %v1076_v27  ;;  %v2212_v19 = vpack.c.bf16 %v3092_v60, %v3051_v39  ;;  %v4049_v60 = vld [vmem:[#allocation4_spill] sm:$0xff] }
 0x614   :  { %v1078_v35 = vpop.permute.xlu0 %1077  ;;  %2201 = vmatprep.subr.bf16.mxu1 %v2200_v6  ;;  %v1123_v5 = vmul.f32 %v1109_v55, %v4039_v63  ;;  %v1124_v0 = vmul.f32 %v1101_v14, %v2557_v43  ;;  %v2214_v39 = vpack.c.bf16 %v3066_v4, %v3008_v53 }
 0x616   :  { %v1164_v10 = vpop.permute.xlu1 %1163 }
 0x617   :  { %2203 = vmatpush1.bf16.msra.mxu1 %v2202_v23  ;;  %v4051_v23 = vld [vmem:[#allocation21_spill] sm:$0xff] }
 0x618   :  { %v1086_v29 = vpop.permute.xlu0 %1085 }
 0x619   :  { %v1098_v38 = vsel %vm187_vm3, %v1070_v28, %v1086_v29  ;;  %v1106_v42 = vsel %vm187_vm3, %v1086_v29, %v1070_v28  ;;  %v4055_v29 = vld [vmem:[#allocation23_spill] sm:$0xff] }
 0x61a   :  { %v1117_v24 = vmul.f32 %v1106_v42, %v4039_v63  ;;  %v1118_v34 = vmul.f32 %v1098_v38, %v2557_v43  ;;  %v1172_v17 = vpop.permute.xlu1 %1171  ;;  %v4056_v38 = vpack.c.bf16 %v4054_v57, %v4055_v29  ;;  %v4077_v57 = vld [vmem:[#allocation36_spill] sm:$0xff]  ;;  %v4078_v29 = vld [vmem:[#allocation34_spill] sm:$0xff] }
 0x61c   :  { %v2134_v54 = vpack.c.bf16 %v1117_v24, %v1115_v16  ;;  %v1094_v44 = vpop.permute.xlu0 %1093  ;;  %v2132_v13 = vpack.c.bf16 %v1118_v34, %v1116_v20 }
 0x61d   :  { %v1102_v31 = vsel %vm187_vm3, %v1078_v35, %v1094_v44  ;;  %v1110_v2 = vsel %vm187_vm3, %v1094_v44, %v1078_v35  ;;  %v4058_v44 = vld [vmem:[#allocation22_spill] sm:$0xff] }
 0x61e   :  { %v1125_v18 = vmul.f32 %v1110_v2, %v4039_v63  ;;  %v1126_v27 = vmul.f32 %v1102_v31, %v2557_v43  ;;  %2133 = vmatprep.subr.bf16.mxu0 %v2132_v13  ;;  %v1180_v47 = vpop.permute.xlu1 %1179  ;;  %v2208_v63 = vpack.c.bf16 %v4045_v62, %v4044_v1  ;;  %v4070_v1 = vld [vmem:[#allocation30_spill] sm:$0xff] }
 0x61f   :  { %2135 = vmatpush1.bf16.msra.mxu0 %v2134_v54  ;;  %v1193_v30 = vsel %vm212_vm4, %v1164_v10, %v1180_v47  ;;  %v1201_v22 = vsel %vm212_vm4, %v1180_v47, %v1164_v10  ;;  %v4052_v10 = vld [vmem:[#allocation20_spill] sm:$0xff] }
 0x620   :  { %v2206_v12 = vpack.c.bf16 %v1125_v18, %v1123_v5  ;;  %v1166_v52 = vpop.permute.xlu0 %1165  ;;  %2137 = vmatprep.subr.bf16.mxu0 %v2136_v51  ;;  %v2204_v15 = vpack.c.bf16 %v1126_v27, %v1124_v0  ;;  %v1211_v8 = vmul.f32 %v1193_v30, %v4049_v60  ;;  %v1212_v41 = vmul.f32 %v1201_v22, %v4050_v40  ;;  %v4057_v54 = vld [vmem:[#allocation24_spill] sm:$0xff]  ;;  %v4064_v27 = vld [vmem:[#allocation26_spill] sm:$0xff] }
 0x621   :  { %v4053_v32 = vpack.c.bf16 %v4051_v23, %v4052_v10  ;;  %v4059_v13 = vpack.c.bf16 %v4057_v54, %v4058_v44  ;;  %v4062_v51 = vpack.c.bf16 %v4060_v7, %v4061_v3  ;;  %v4063_v18 = vld [vmem:[#allocation28_spill] sm:$0xff]  ;;  %v4074_v23 = vld [vmem:[#allocation37_spill] sm:$0xff]  ;;  %v4075_v10 = vld [vmem:[#allocation35_spill] sm:$0xff] }
 0x622   :  { %2205 = vmatprep.subr.bf16.mxu1 %v2204_v15  ;;  %v1188_v46 = vpop.permute.xlu1 %1187  ;;  %v4065_v47 = vpack.c.bf16 %v4063_v18, %v4064_v27  ;;  %v4067_v15 = vld [vmem:[#allocation31_spill] sm:$0xff]  ;;  %v4084_v54 = vld [vmem:[#allocation38_spill] sm:$0xff]  ;;  %v4086_v7 = vld [vmem:[#allocation8_spill] sm:$0xff] }
 0x623   :  { %2139 = vmatpush1.bf16.msra.mxu0 %v2138_v59  ;;  %2207 = vmatpush1.bf16.msra.mxu1 %v2206_v12  ;;  %v1197_v25 = vsel %vm212_vm4, %v1172_v17, %v1188_v46  ;;  %v1205_v35 = vsel %vm212_vm4, %v1188_v46, %v1172_v17 }
 0x624   :  { %v1174_v43 = vpop.permute.xlu0 %1173  ;;  %2141 = vmatprep.subr.bf16.mxu0 %v2140_v45  ;;  %2209 = vmatprep.subr.bf16.mxu1 %v2208_v63  ;;  %v1219_v24 = vmul.f32 %v1197_v25, %v4049_v60  ;;  %v1220_v34 = vmul.f32 %v1205_v35, %v4050_v40  ;;  %v4069_v45 = vld [vmem:[#allocation32_spill] sm:$0xff] }
 0x625   :  { %v4071_v62 = vpack.c.bf16 %v4069_v45, %v4070_v1 }
 0x626   :  { %v1244_v36 = vpop.permute.xlu1 %1243 }
 0x627   :  { %2143 = vmatpush1.bf16.msra.mxu0 %v2142_v26  ;;  %2211 = vmatpush1.bf16.msra.mxu1 %v2210_v37  ;;  %v4073_v37 = vld [vmem:[#allocation7_spill] sm:$0xff] }
 0x628   :  { %v1182_v28 = vpop.permute.xlu0 %1181  ;;  %2145 = vmatprep.subr.bf16.mxu0 %v4048_v48  ;;  %2213 = vmatprep.subr.bf16.mxu1 %v2212_v19 }
 0x629   :  { %v1194_v58 = vsel %vm212_vm4, %v1166_v52, %v1182_v28  ;;  %v1202_v33 = vsel %vm212_vm4, %v1182_v28, %v1166_v52  ;;  %v4066_v52 = vld [vmem:[#allocation33_spill] sm:$0xff] }
 0x62a   :  { %v1213_v6 = vmul.f32 %v1194_v58, %v4049_v60  ;;  %v1214_v49 = vmul.f32 %v1202_v33, %v4050_v40  ;;  %v1252_v11 = vpop.permute.xlu1 %1251  ;;  %v4068_v50 = vpack.c.bf16 %v4066_v52, %v4067_v15 }
 0x62b   :  { %2147 = vmatpush1.bf16.msra.mxu0 %v4053_v32  ;;  %2215 = vmatpush1.bf16.msra.mxu1 %v2214_v39  ;;  %v4076_v32 = vpack.c.bf16 %v4074_v23, %v4075_v10  ;;  %v1629_v23 = vld [vmem:[%s3932_s4 + $0x30] sm:$0xff] }
 0x62c   :  { %v2150_v53 = vpack.c.bf16 %v1213_v6, %v1211_v8  ;;  %v1190_v4 = vpop.permute.xlu0 %1189  ;;  %2217 = vmatprep.subr.bf16.mxu1 %v4056_v38  ;;  %v2148_v42 = vpack.c.bf16 %v1214_v49, %v1212_v41  ;;  %v4079_v38 = vpack.c.bf16 %v4077_v57, %v4078_v29  ;;  %v4101_v57 = vld [vmem:[#allocation10_spill] sm:$0xff] }
 0x62d   :  { %v1198_v16 = vsel %vm212_vm4, %v1174_v43, %v1190_v4  ;;  %v1206_v20 = vsel %vm212_vm4, %v1190_v4, %v1174_v43 }
 0x62e   :  { %v1221_v17 = vmul.f32 %v1198_v16, %v4049_v60  ;;  %v1222_v14 = vmul.f32 %v1206_v20, %v4050_v40  ;;  %2149 = vmatprep.subr.bf16.mxu0 %v2148_v42  ;;  %v1260_v55 = vpop.permute.xlu1 %1259  ;;  %v4080_v16 = vld [vmem:[#allocation41_spill] sm:$0xff]  ;;  %v4081_v20 = vld [vmem:[#allocation39_spill] sm:$0xff] }
 0x62f   :  { %2151 = vmatpush1.bf16.msra.mxu0 %v2150_v53  ;;  %2219 = vmatpush1.bf16.msra.mxu1 %v4059_v13  ;;  %v1273_v59 = vsel %vm237_vm5, %v1244_v36, %v1260_v55  ;;  %v1281_v46 = vsel %vm237_vm5, %v1260_v55, %v1244_v36  ;;  %v4083_v55 = vld [vmem:[#allocation40_spill] sm:$0xff] }
 0x630   :  { %v2222_v31 = vpack.c.bf16 %v1221_v17, %v1219_v24  ;;  %v1246_v2 = vpop.permute.xlu0 %1245  ;;  %2153 = vmatprep.subr.bf16.mxu0 %v4062_v51  ;;  %v2220_v5 = vpack.c.bf16 %v1222_v14, %v1220_v34  ;;  %v1291_v56 = vmul.f32 %v1273_v59, %v4072_v9  ;;  %v1292_v19 = vmul.f32 %v1281_v46, %v4073_v37  ;;  %v4087_v51 = vld [vmem:[#allocation9_spill] sm:$0xff] }
 0x631   :  { %v4082_v24 = vpack.c.bf16 %v4080_v16, %v4081_v20  ;;  %v4085_v44 = vpack.c.bf16 %v4083_v55, %v4084_v54 }
 0x632   :  { %2221 = vmatprep.subr.bf16.mxu1 %v2220_v5  ;;  %v1268_v0 = vpop.permute.xlu1 %1267 }
 0x633   :  { %2155 = vmatpush1.bf16.msra.mxu0 %v4065_v47  ;;  %2223 = vmatpush1.bf16.msra.mxu1 %v2222_v31  ;;  %v1277_v28 = vsel %vm237_vm5, %v1252_v11, %v1268_v0  ;;  %v1285_v48 = vsel %vm237_vm5, %v1268_v0, %v1252_v11 }
 0x634   :  { %v1254_v12 = vpop.permute.xlu0 %1253  ;;  %2225 = vmatprep.subr.bf16.mxu1 %v4068_v50  ;;  %v1299_v40 = vmul.f32 %v1277_v28, %v4072_v9  ;;  %v1300_v41 = vmul.f32 %v1285_v48, %v4073_v37  ;;  %v4092_v28 = vld [vmem:[#allocation42_spill] sm:$0xff] }
 0x636   :  { %v1324_v21 = vpop.permute.xlu1 %1323 }
 0x637   :  { %2227 = vmatpush1.bf16.msra.mxu1 %v4071_v62 }
 0x638   :  { %v1262_v63 = vpop.permute.xlu0 %1261 }
 0x639   :  { %v1274_v43 = vsel %vm237_vm5, %v1246_v2, %v1262_v63  ;;  %v1282_v26 = vsel %vm237_vm5, %v1262_v63, %v1246_v2  ;;  %v1623_v63 = vld [vmem:[%s3932_s4] sm:$0xff] }
 0x63a   :  { %v1293_v30 = vmul.f32 %v1274_v43, %v4072_v9  ;;  %v1294_v22 = vmul.f32 %v1282_v26, %v4073_v37  ;;  %v1332_v36 = vpop.permute.xlu1 %1331 }
 0x63c   :  { %v2158_v58 = vpack.c.bf16 %v1293_v30, %v1291_v56  ;;  %v1270_v33 = vpop.permute.xlu0 %1269  ;;  %v2156_v39 = vpack.c.bf16 %v1294_v22, %v1292_v19  ;;  %v4089_v56 = vld [vmem:[#allocation43_spill] sm:$0xff] }
 0x63d   :  { %v1278_v60 = vsel %vm237_vm5, %v1254_v12, %v1270_v33  ;;  %v1286_v8 = vsel %vm237_vm5, %v1270_v33, %v1254_v12  ;;  %v1627_v22 = vld [vmem:[%s3932_s4 + $0x20] sm:$0xff] }
 0x63e   :  { %v1301_v6 = vmul.f32 %v1278_v60, %v4072_v9  ;;  %v1302_v49 = vmul.f32 %v1286_v8, %v4073_v37  ;;  %2157 = vmatprep.subr.bf16.mxu0 %v2156_v39  ;;  %v1340_v25 = vpop.permute.xlu1 %1339  ;;  %v4088_v9 = vld [vmem:[#allocation45_spill] sm:$0xff]  ;;  %v4095_v60 = vld [vmem:[#allocation47_spill] sm:$0xff] }
 0x63f   :  { %2159 = vmatpush1.bf16.msra.mxu0 %v2158_v58  ;;  %v1353_v17 = vsel %vm262_vm6, %v1324_v21, %v1340_v25  ;;  %v1361_v14 = vsel %vm262_vm6, %v1340_v25, %v1324_v21  ;;  %v4090_v37 = vpack.c.bf16 %v4088_v9, %v4089_v56  ;;  %v1626_v58 = vld [vmem:[%s3932_s4 + $0x18] sm:$0xff]  ;;  %v4094_v39 = vld [vmem:[#allocation49_spill] sm:$0xff]  ;;  %v4097_v25 = vld [vmem:[#allocation48_spill] sm:$0xff] }
 0x640   :  { %v2230_v11 = vpack.c.bf16 %v1301_v6, %v1299_v40  ;;  %v1326_v35 = vpop.permute.xlu0 %1325  ;;  %2161 = vmatprep.subr.bf16.mxu0 %v4076_v32  ;;  %v2228_v53 = vpack.c.bf16 %v1302_v49, %v1300_v41  ;;  %v1371_v3 = vmul.f32 %v1353_v17, %v4086_v7  ;;  %v1372_v5 = vmul.f32 %v1361_v14, %v4087_v51  ;;  %v1630_v40 = vld [vmem:[%s3932_s4 + $0x38] sm:$0xff]  ;;  %v1633_v32 = vld [vmem:[%s3932_s4 + $0x50] sm:$0xff]  ;;  %v1632_v17 = vld [vmem:[%s3932_s4 + $0x48] sm:$0xff] }
 0x641   :  { %v4096_v8 = vpack.c.bf16 %v4094_v39, %v4095_v60 }
 0x642   :  { %2229 = vmatprep.subr.bf16.mxu1 %v2228_v53  ;;  %v1348_v4 = vpop.permute.xlu1 %1347  ;;  %v4100_v53 = vld [vmem:[#allocation11_spill] sm:$0xff] }
 0x643   :  { %2163 = vmatpush1.bf16.msra.mxu0 %v4079_v38  ;;  %2231 = vmatpush1.bf16.msra.mxu1 %v2230_v11  ;;  %v1357_v27 = vsel %vm262_vm6, %v1332_v36, %v1348_v4  ;;  %v1365_v47 = vsel %vm262_vm6, %v1348_v4, %v1332_v36  ;;  %v4091_v36 = vld [vmem:[#allocation44_spill] sm:$0xff]  ;;  %v4098_v11 = vld [vmem:[#allocation46_spill] sm:$0xff] }
 0x644   :  { %v1334_v42 = vpop.permute.xlu0 %1333  ;;  %2233 = vmatprep.subr.bf16.mxu1 %v4082_v24  ;;  %v1379_v46 = vmul.f32 %v1357_v27, %v4086_v7  ;;  %v1380_v45 = vmul.f32 %v1365_v47, %v4087_v51  ;;  %v4093_v48 = vpack.c.bf16 %v4091_v36, %v4092_v28  ;;  %v1631_v27 = vld [vmem:[%s3932_s4 + $0x40] sm:$0xff]  ;;  %v1634_v47 = vld [vmem:[%s3932_s4 + $0x58] sm:$0xff] }
 0x646   :  { %v1404_v34 = vpop.permute.xlu1 %1403 }
 0x647   :  { %2235 = vmatpush1.bf16.msra.mxu1 %v4085_v44 }
 0x648   :  { %v1342_v13 = vpop.permute.xlu0 %1341 }
 0x649   :  { %v1354_v31 = vsel %vm262_vm6, %v1326_v35, %v1342_v13  ;;  %v1362_v2 = vsel %vm262_vm6, %v1342_v13, %v1326_v35  ;;  %v4099_v35 = vpack.c.bf16 %v4097_v25, %v4098_v11 }
 0x64a   :  { %v1373_v0 = vmul.f32 %v1354_v31, %v4086_v7  ;;  %v1374_v18 = vmul.f32 %v1362_v2, %v4087_v51  ;;  %v1412_v12 = vpop.permute.xlu1 %1411 }
 0x64c   :  { %v2166_v52 = vpack.c.bf16 %v1373_v0, %v1371_v3  ;;  %v1350_v15 = vpop.permute.xlu0 %1349  ;;  %v2164_v50 = vpack.c.bf16 %v1374_v18, %v1372_v5  ;;  %v4102_v0 = vmov 0.0   ;;  %v1628_v18 = vld [vmem:[%s3932_s4 + $0x28] sm:$0xff] }
 0x64d   :  { %v1358_v21 = vsel %vm262_vm6, %v1334_v42, %v1350_v15  ;;  %v1366_v59 = vsel %vm262_vm6, %v1350_v15, %v1334_v42 }
 0x64e   :  { %v1381_v1 = vmul.f32 %v1358_v21, %v4086_v7  ;;  %v1382_v62 = vmul.f32 %v1366_v59, %v4087_v51  ;;  %2165 = vmatprep.subr.bf16.mxu0 %v2164_v50  ;;  %v1420_v30 = vpop.permute.xlu1 %1419  ;;  %v1625_v51 = vld [vmem:[%s3932_s4 + $0x10] sm:$0xff] }
 0x64f   :  { %2167 = vmatpush1.bf16.msra.mxu0 %v2166_v52  ;;  %v1433_v41 = vsel %vm287_vm7, %v1404_v34, %v1420_v30  ;;  %v1441_v6 = vsel %vm287_vm7, %v1420_v30, %v1404_v34 }
 0x650   :  { %v2238_v43 = vpack.c.bf16 %v1381_v1, %v1379_v46  ;;  %v1406_v26 = vpop.permute.xlu0 %1405  ;;  %2169 = vmatprep.subr.bf16.mxu0 %v4090_v37  ;;  %v2236_v19 = vpack.c.bf16 %v1382_v62, %v1380_v45  ;;  %v1451_v4 = vmul.f32 %v1433_v41, %v4100_v53  ;;  %v1452_v29 = vmul.f32 %v1441_v6, %v4101_v57 }
 0x652   :  { %1729 = vmatmul.mubr.f32.vlgmr.msra.gmra.mrb[8].mxu0 %v1623_v63  ;;  %2237 = vmatprep.subr.bf16.mxu1 %v2236_v19  ;;  %v1428_v49 = vpop.permute.xlu1 %1427 }
 0x653   :  { %2171 = vmatpush1.bf16.msra.mxu0 %v4093_v48  ;;  %2239 = vmatpush1.bf16.msra.mxu1 %v2238_v43  ;;  %v1437_v16 = vsel %vm287_vm7, %v1412_v12, %v1428_v49  ;;  %v1445_v34 = vsel %vm287_vm7, %v1428_v49, %v1412_v12 }
 0x654   :  { %v1414_v33 = vpop.permute.xlu0 %1413  ;;  %2241 = vmatprep.subr.bf16.mxu1 %v4096_v8  ;;  %1734 = vmatprep.mubr.f32.mxu0 %v1627_v22  ;;  %v1459_v44 = vmul.f32 %v1437_v16, %v4100_v53  ;;  %v1460_v2 = vmul.f32 %v1445_v34, %v4101_v57 }
 0x656   :  { %1735 = vmatmul.mubr.f32.gmra.mrb[10].mxu0 %v1626_v58  ;;  %1907 = vmatmul.mubr.f32.vlgmr.msra.gmra.mrb[8].mxu1 %v1623_v63 }
 0x657   :  { %2243 = vmatpush1.bf16.msra.mxu1 %v4099_v35  ;;  %1740 = vmatprep.mubr.f32.mxu0 %v1630_v40 }
 0x658   :  { %v1422_v10 = vpop.permute.xlu0 %1421  ;;  %1912 = vmatprep.mubr.f32.mxu1 %v1627_v22 }
 0x659   :  { %v1434_v38 = vsel %vm287_vm7, %v1406_v26, %v1422_v10  ;;  %v1442_v42 = vsel %vm287_vm7, %v1422_v10, %v1406_v26 }
 0x65a   :  { %v1453_v20 = vmul.f32 %v1434_v38, %v4100_v53  ;;  %v1454_v24 = vmul.f32 %v1442_v42, %v4101_v57  ;;  %1741 = vmatmul.mubr.f32.gmra.mrb[12].mxu0 %v1629_v23  ;;  %1913 = vmatmul.mubr.f32.gmra.mrb[10].mxu1 %v1626_v58 }
 0x65b   :  { %1746 = vmatprep.mubr.f32.mxu0 %v1633_v32  ;;  %1918 = vmatprep.mubr.f32.mxu1 %v1630_v40 }
 0x65c   :  { %v2174_v14 = vpack.c.bf16 %v1453_v20, %v1451_v4  ;;  %v1430_v55 = vpop.permute.xlu0 %1429  ;;  %v2172_v54 = vpack.c.bf16 %v1454_v24, %v1452_v29 }
 0x65d   :  { %v1438_v13 = vsel %vm287_vm7, %v1414_v33, %v1430_v55  ;;  %v1446_v31 = vsel %vm287_vm7, %v1430_v55, %v1414_v33 }
 0x65e   :  { %v1461_v7 = vmul.f32 %v1438_v13, %v4100_v53  ;;  %v1462_v3 = vmul.f32 %v1446_v31, %v4101_v57  ;;  %1747 = vmatmul.mubr.f32.gmra.mrb[14].mxu0 %v1632_v17  ;;  %2173 = vmatprep.subr.bf16.mxu0 %v2172_v54 }
 0x65f   :  { %1919 = vmatmul.mubr.f32.gmra.mrb[12].mxu1 %v1629_v23  ;;  %2175 = vmatpush1.bf16.msra.mxu0 %v2174_v14 }
 0x660   :  { %v2246_v5 = vpack.c.bf16 %v1461_v7, %v1459_v44  ;;  %1817 = vmatprep.mubr.f32.mxu0 %v4102_v0  ;;  %1924 = vmatprep.mubr.f32.mxu1 %v1633_v32  ;;  %v2244_v61 = vpack.c.bf16 %v1462_v3, %v1460_v2 }
 0x662   :  { %2064 = vmatmul.mubr.msk.f32.vlgmr.msra.gmra.mrb[8].mxu0 %vm1651_vm9, %v1625_v51  ;;  %2245 = vmatprep.subr.bf16.mxu1 %v2244_v61 }
 0x663   :  { %1925 = vmatmul.mubr.f32.gmra.mrb[14].mxu1 %v1632_v17  ;;  %1823 = vmatprep.mubr.f32.mxu0 %v4102_v0  ;;  %v1637_v12 = vpop.permute.xlu1 %1636 }
 0x664   :  { %2247 = vmatpush1.bf16.msra.mxu1 %v2246_v5  ;;  %1995 = vmatprep.mubr.f32.mxu1 %v4102_v0 }
 0x666   :  { %2065 = vmatmul.mubr.msk.f32.gmra.mrb[10].mxu0 %vm1651_vm9, %v1628_v18 }
 0x667   :  { %2068 = vmatmul.mubr.msk.f32.vlgmr.msra.gmra.mrb[8].mxu1 %vm1651_vm9, %v1625_v51  ;;  %1829 = vmatprep.mubr.f32.mxu0 %v4102_v0  ;;  %v1645_v30 = vpop.permute.xlu1 %1644 }
 0x668   :  { %2001 = vmatprep.mubr.f32.mxu1 %v4102_v0 }
 0x66a   :  { %2066 = vmatmul.mubr.msk.f32.gmra.mrb[12].mxu0 %vm1651_vm9, %v1631_v27 }
 0x66b   :  { %2069 = vmatmul.mubr.msk.f32.gmra.mrb[10].mxu1 %vm1651_vm9, %v1628_v18  ;;  %1835 = vmatprep.mubr.f32.mxu0 %v4102_v0 }
 0x66c   :  { %2007 = vmatprep.mubr.f32.mxu1 %v4102_v0 }
 0x66d   :  { %v1641_v46 = vpop.permute.xlu0 %1640 }
 0x66e   :  { %2067 = vmatmul.mubr.msk.f32.gmra.mrb[14].mxu0 %vm1651_vm9, %v1634_v47 }
 0x66f   :  { %2070 = vmatmul.mubr.msk.f32.gmra.mrb[12].mxu1 %vm1651_vm9, %v1631_v27 }
 0x670   :  { %2013 = vmatprep.mubr.f32.mxu1 %v4102_v0 }
 0x671   :  { %v1649_v49 = vpop.permute.xlu0 %1648 }
 0x673   :  { %2071 = vmatmul.mubr.msk.f32.gmra.mrb[14].mxu1 %vm1651_vm9, %v1634_v47 }
 0x735   :  { %v1819_v52 = vpop.f32.mrb[8].mxu0 }
 0x736   :  { %v2248_v15 = vadd.f32 %v1819_v52, %v1637_v12  ;;  %v1821_v50 = vpop.f32.mrb[9].mxu0 }
 0x737   :  { %v2249_v21 = vadd.f32 %v1821_v50, %v1637_v12 }
 0x738   :  { %v2020_v59 = vmax.f32 %v2248_v15, 0.0 }
 0x739   :  { %v2021_v45 = vmax.f32 %v2249_v21, 0.0  ;;  %v1825_v1 = vpop.f32.mrb[10].mxu0 }
 0x73a   :  { %2036 = vst [vmem:[%s3933_s5] sm:$0xff] %v2020_v59  ;;  %v2250_v62 = vadd.f32 %v1825_v1, %v1641_v46  ;;  %v1997_v63 = vpop.f32.mrb[8].mxu1  ;;  %v1827_v43 = vpop.f32.mrb[11].mxu0 }
 0x73b   :  { %2037 = vst [vmem:[%s3933_s5 + $0x8] sm:$0xff] %v2021_v45  ;;  %v2256_v26 = vadd.f32 %v1997_v63, %v1637_v12  ;;  %v2251_v9 = vadd.f32 %v1827_v43, %v1641_v46  ;;  %v1999_v56 = vpop.f32.mrb[9].mxu1 }
 0x73c   :  { %v2024_v37 = vmax.f32 %v2250_v62, 0.0  ;;  %v2257_v19 = vadd.f32 %v1999_v56, %v1637_v12 }
 0x73d   :  { %v2022_v22 = vmax.f32 %v2256_v26, 0.0  ;;  %v2025_v36 = vmax.f32 %v2251_v9, 0.0  ;;  %v1831_v28 = vpop.f32.mrb[12].mxu0 }
 0x73e   :  { %2038 = vst [vmem:[%s3933_s5 + $0x10] sm:$0xff] %v2024_v37  ;;  %v2023_v48 = vmax.f32 %v2257_v19, 0.0  ;;  %v2252_v58 = vadd.f32 %v1831_v28, %v1645_v30  ;;  %v2003_v33 = vpop.f32.mrb[10].mxu1  ;;  %v1833_v39 = vpop.f32.mrb[13].mxu0 }
 0x73f   :  { %2044 = vst [vmem:[%s3933_s5 + $0x40] sm:$0xff] %v2022_v22  ;;  %2039 = vst [vmem:[%s3933_s5 + $0x18] sm:$0xff] %v2025_v36  ;;  %v2258_v60 = vadd.f32 %v2003_v33, %v1641_v46  ;;  %v2253_v8 = vadd.f32 %v1833_v39, %v1645_v30  ;;  %v2005_v40 = vpop.f32.mrb[11].mxu1 }
 0x740   :  { %2045 = vst [vmem:[%s3933_s5 + $0x48] sm:$0xff] %v2023_v48  ;;  %v2028_v41 = vmax.f32 %v2252_v58, 0.0  ;;  %v2259_v6 = vadd.f32 %v2005_v40, %v1641_v46 }
 0x741   :  { %v2026_v25 = vmax.f32 %v2258_v60, 0.0  ;;  %v2029_v11 = vmax.f32 %v2253_v8, 0.0  ;;  %v1837_v35 = vpop.f32.mrb[14].mxu0 }
 0x742   :  { %2040 = vst [vmem:[%s3933_s5 + $0x20] sm:$0xff] %v2028_v41  ;;  %v2027_v23 = vmax.f32 %v2259_v6, 0.0  ;;  %v2254_v10 = vadd.f32 %v1837_v35, %v1649_v49  ;;  %v2009_v32 = vpop.f32.mrb[12].mxu1  ;;  %v1839_v53 = vpop.f32.mrb[15].mxu0 }
 0x743   :  { %2046 = vst [vmem:[%s3933_s5 + $0x50] sm:$0xff] %v2026_v25  ;;  %2041 = vst [vmem:[%s3933_s5 + $0x28] sm:$0xff] %v2029_v11  ;;  %v2260_v4 = vadd.f32 %v2009_v32, %v1645_v30  ;;  %v2255_v57 = vadd.f32 %v1839_v53, %v1649_v49  ;;  %v2011_v29 = vpop.f32.mrb[13].mxu1 }
 0x744   :  { %2047 = vst [vmem:[%s3933_s5 + $0x58] sm:$0xff] %v2027_v23  ;;  %v2032_v38 = vmax.f32 %v2254_v10, 0.0  ;;  %v2261_v42 = vadd.f32 %v2011_v29, %v1645_v30 }
 0x745   :  { %v2030_v16 = vmax.f32 %v2260_v4, 0.0  ;;  %v2033_v20 = vmax.f32 %v2255_v57, 0.0 }
 0x746   :  { %2042 = vst [vmem:[%s3933_s5 + $0x30] sm:$0xff] %v2032_v38  ;;  %v2031_v24 = vmax.f32 %v2261_v42, 0.0  ;;  %v2015_v34 = vpop.f32.mrb[14].mxu1 }
 0x747   :  { %2048 = vst [vmem:[%s3933_s5 + $0x60] sm:$0xff] %v2030_v16  ;;  %2043 = vst [vmem:[%s3933_s5 + $0x38] sm:$0xff] %v2033_v20  ;;  %v2262_v17 = vadd.f32 %v2015_v34, %v1649_v49  ;;  %v2017_v14 = vpop.f32.mrb[15].mxu1 }
 0x748   :  { %2049 = vst [vmem:[%s3933_s5 + $0x68] sm:$0xff] %v2031_v24  ;;  %v2263_v55 = vadd.f32 %v2017_v14, %v1649_v49 }
 0x749   :  { %v2034_v54 = vmax.f32 %v2262_v17, 0.0 }
 0x74a   :  { %v2035_v44 = vmax.f32 %v2263_v55, 0.0 }
 0x74b   :  { %2050 = vst [vmem:[%s3933_s5 + $0x70] sm:$0xff] %v2034_v54 }
 0x74c   :  { %2051 = vst [vmem:[%s3933_s5 + $0x78] sm:$0xff] %v2035_v44 }

</bundles_post_ra>
